<compile_context>
chip_gen: v7x
topology: tpu7x:2x2x1
jax: 0.10.0
libtpu: 0.0.40
codegen_flags: <defaults>
</compile_context>

<pallas_src>
import jax
import jax.numpy as jnp
from jax.experimental import pallas as pl
from jax.experimental.pallas import tpu as pltpu


def _round_up(x, m):
    return ((x + m - 1) // m) * m


def temp_vote_kernel(temp_ref, bias_ref, l_ref, w_ref, out_ref):
    # l_ref:   (TILE, D)  VMEM  literal-embedding rows
    # w_ref:   (1, D)     VMEM  vote weight as a lane-dense row (resident)
    # temp_ref, bias_ref: (1,)  SMEM scalars
    # out_ref: (1, TILE)  VMEM  lane-dense logits
    prod = l_ref[...] * w_ref[...]            # VPU broadcast multiply (tile, d)
    logits = jnp.sum(prod, axis=-1)           # XLU lane reduce -> (tile,)
    inv_t = 1.0 / temp_ref[0]                 # one scalar reciprocal per step
    scaled = (logits + bias_ref[0]) * inv_t   # fused bias + temperature scaling
    out_ref[...] = scaled.reshape(1, -1).astype(out_ref.dtype)


def temperature_model_forward(L, w_vote, b_vote, temperature, *, tile=2048):
    """vote = (L @ w_vote + b_vote) / temperature, in one Pallas kernel."""
    n_lits, d = L.shape
    L = L.astype(jnp.float32)
    w_row = jnp.reshape(w_vote, (1, d)).astype(jnp.float32)
    b_vote = jnp.reshape(b_vote, (1,)).astype(jnp.float32)
    temperature = jnp.reshape(temperature, (1,)).astype(jnp.float32)

    # Effective tile: lane-dense (multiple of 128) and no bigger than needed.
    tile = max(128, min(tile, _round_up(n_lits, 128)))
    n_pad = _round_up(n_lits, tile)
    if n_pad != n_lits:
        # Ragged literal counts: pad rows to a tile multiple (sliced off below).
        L = jnp.pad(L, ((0, n_pad - n_lits), (0, 0)))
    n_tiles = n_pad // tile

    out = pl.pallas_call(
        temp_vote_kernel,
        out_shape=jax.ShapeDtypeStruct((1, n_pad), jnp.float32),
        grid_spec=pltpu.PrefetchScalarGridSpec(
            num_scalar_prefetch=0,
            grid=(n_tiles,),
            in_specs=[
                pl.BlockSpec(memory_space=pltpu.MemorySpace.SMEM),  # temperature
                pl.BlockSpec(memory_space=pltpu.MemorySpace.SMEM),  # bias
                pl.BlockSpec((tile, d), lambda i: (i, 0)),          # L row tile
                pl.BlockSpec((1, d), lambda i: (0, 0)),             # w row, resident
            ],
            out_specs=pl.BlockSpec((1, tile), lambda i: (0, i)),    # lane-dense
        ),
        compiler_params=pltpu.CompilerParams(
            dimension_semantics=("parallel",)),
    )(temperature, b_vote, L, w_row)

    # Free layout plumbing back to the PyTorch-style (n_lits, 1) column.
    return out.reshape(n_pad, 1)[:n_lits]


if __name__ == "__main__":
    key = jax.random.PRNGKey(0)
    k_l, k_w = jax.random.split(key)

    n_lits, d = 256, 128   # small synthetic problem: 128 vars -> 256 literals
    L = jax.random.normal(k_l, (n_lits, d), dtype=jnp.float32)
    w_vote = jax.random.normal(k_w, (d, 1), dtype=jnp.float32) * 0.05
    b_vote = jnp.array([0.1], dtype=jnp.float32)
    # nn.Parameter(torch.ones(1)) -> deterministic init of 1.0; perturb so the
    # temperature division is observable.
    temperature = jnp.array([1.5], dtype=jnp.float32)

    vote = temperature_model_forward(L, w_vote, b_vote, temperature)
    vote = jax.block_until_ready(vote)

    # Reference check in plain JAX.
    ref = (L @ w_vote + b_vote) / temperature
    assert vote.shape == (n_lits, 1)
    assert jnp.allclose(vote, ref, atol=1e-5, rtol=1e-5)

    print("KERNEL_OK")
</pallas_src>

<mosaic_0001>
module attributes {stable_mosaic.version = 11 : i64} {
  func.func @temp_vote_kernel(%arg0: i32, %arg1: memref<1xf32, #tpu.memory_space<smem>>, %arg2: memref<1xf32, #tpu.memory_space<smem>>, %arg3: memref<256x128xf32, #tpu.memory_space<vmem>>, %arg4: memref<1x128xf32, #tpu.memory_space<vmem>>, %arg5: memref<1x256xf32, #tpu.memory_space<vmem>>) attributes {dimension_semantics = [#tpu.dimension_semantics<parallel>], iteration_bounds = array<i64: 1>, scalar_prefetch = 0 : i64, scratch_operands = 0 : i64, tpu.core_type = #tpu.core_type<tc>, window_params = [{transform_indices = @transform_0, window_bounds = array<i64: 1>}, {transform_indices = @transform_1, window_bounds = array<i64: 1>}, {transform_indices = @transform_2, window_bounds = array<i64: 256, 128>}, {pipeline_mode = #tpu.pipeline_mode<synchronous>, transform_indices = @transform_3, window_bounds = array<i64: 1, 128>}, {transform_indices = @transform_4, window_bounds = array<i64: 1, 256>}]} {
    %c0 = arith.constant 0 : index
    %c0_0 = arith.constant 0 : index
    %0 = vector.load %arg3[%c0, %c0_0] : memref<256x128xf32, #tpu.memory_space<vmem>>, vector<256x128xf32>
    %c0_1 = arith.constant 0 : index
    %c0_2 = arith.constant 0 : index
    %1 = vector.load %arg4[%c0_1, %c0_2] : memref<1x128xf32, #tpu.memory_space<vmem>>, vector<1x128xf32>
    %2 = vector.broadcast %1 : vector<1x128xf32> to vector<256x128xf32>
    %3 = arith.mulf %0, %2 : vector<256x128xf32>
    %cst = arith.constant dense<0.000000e+00> : vector<256xf32>
    %4 = vector.multi_reduction <add>, %3, %cst [1] : vector<256x128xf32> to vector<256xf32>
    %c0_3 = arith.constant 0 : index
    %5 = memref.load %arg1[%c0_3] : memref<1xf32, #tpu.memory_space<smem>>
    %cst_4 = arith.constant 1.000000e+00 : f32
    %6 = arith.divf %cst_4, %5 : f32
    %c0_5 = arith.constant 0 : index
    %7 = memref.load %arg2[%c0_5] : memref<1xf32, #tpu.memory_space<smem>>
    %8 = vector.broadcast %7 : f32 to vector<256xf32>
    %9 = arith.addf %4, %8 : vector<256xf32>
    %10 = vector.broadcast %6 : f32 to vector<256xf32>
    %11 = arith.mulf %9, %10 : vector<256xf32>
    %12 = vector.shape_cast %11 : vector<256xf32> to vector<1x256xf32>
    %c0_6 = arith.constant 0 : index
    %c0_7 = arith.constant 0 : index
    %13 = vector.load %arg5[%c0_6, %c0_7] : memref<1x256xf32, #tpu.memory_space<vmem>>, vector<1x256xf32>
    tpu.vector_store %arg5[%c0_6, %c0_7], %12 {strides = array<i32>} : memref<1x256xf32, #tpu.memory_space<vmem>>, vector<1x256xf32>,
    return
  }
  func.func @transform_0(%arg0: i32) -> i32 {
    %c0_i32 = arith.constant 0 : i32
    %c0_i32_0 = arith.constant 0 : i32
    return %c0_i32 : i32
  }
  func.func @transform_1(%arg0: i32) -> i32 {
    %c0_i32 = arith.constant 0 : i32
    %c0_i32_0 = arith.constant 0 : i32
    return %c0_i32 : i32
  }
  func.func @transform_2(%arg0: i32) -> (i32, i32) {
    %c0_i32 = arith.constant 0 : i32
    %c0_i32_0 = arith.constant 0 : i32
    return %arg0, %c0_i32 : i32, i32
  }
  func.func @transform_3(%arg0: i32) -> (i32, i32) {
    %c0_i32 = arith.constant 0 : i32
    %c0_i32_0 = arith.constant 0 : i32
    %c0_i32_1 = arith.constant 0 : i32
    return %c0_i32, %c0_i32_0 : i32, i32
  }
  func.func @transform_4(%arg0: i32) -> (i32, i32) {
    %c0_i32 = arith.constant 0 : i32
    %c0_i32_0 = arith.constant 0 : i32
    return %c0_i32, %arg0 : i32, i32
  }
}

</mosaic_0001>

<bundles_post_ra>
// kernel: tpu_custom_call.1
= control target key start
LH: loop header
LB: loop body
LE: loop exit
PB: predicated region body
PF: predicated region fallthrough
CT: control target
= control target key end

     0   :  { %11 = vsyncpa [#allocation5], 0  ;;  %s4306_s0 = inlined_call_operand.<no memory space> [shape: f32[1], index: 0, kind: input, shape index: {}]   ;;  %s4307_s1 = inlined_call_operand.<no memory space> [shape: f32[1], index: 1, kind: input, shape index: {}]   ;;  %s4308_s2 = inlined_call_operand.hbm [shape: f32[256,128], index: 2, kind: input, shape index: {}]   ;;  %s4309_s3 = inlined_call_operand.vmem [shape: f32[1,128], index: 3, kind: input, shape index: {}]   ;;  %s4310_s4 = inlined_call_operand.hbm [shape: f32[1,256], index: 4, kind: output, shape index: {}]  }
   0x1   :  { %12 = vsyncpa [#allocation6], 0  ;;  %s3247_s15 = smov [#allocation4]   ;;  %s3199_s19 = scalar_lea.hbm %s4308_s2, 4096 }
   0x2   :  { %s22_s16 = sshll.u32 %s3247_s15, 4  ;;  %p3200_p0 = scmp.ne.s32.totalorder %s4308_s2, %s3199_s19  ;;  %s23_s16 = int_to_ptr.vmem [resolvable:$true] %s22_s16 }
   0x3   :  { %p3203_p1 = scmp.lt.u32.totalorder %s3199_s19, %s4308_s2 }
   0x5   :  { %p3205_p2 = pnand %p3203_p1, %p3200_p0 }
   0x7   :  { %3208 = shalt.err (!%p3205_p2)
}
   0x8   :  { %s3209_s24 = scalar_lea.vmem %s23_s16, 4096  ;;  %p3214_p4 = scmp.lt.s32.totalorder %s23_s16, %s23_s16 }
   0x9   :  { %p3210_p3 = scmp.ne.s32.totalorder %s23_s16, %s3209_s24  ;;  %p3215_p5 = scmp.lt.s32.totalorder %s3209_s24, %s3209_s24 }
   0xb   :  { %p3216_p6 = por %p3215_p5, %p3214_p4 }
   0xd   :  { %p3217_p7 = pnand %p3216_p6, %p3210_p3 }
   0xf   :  { %3220 = shalt.err (!%p3217_p7)
}
  0x10   :  { %s3248_s25 = smov 128   ;;  %s3249_s26 = smov 8  }
  0x11   :  { %28 = dma.hbm_to_vmem [thread:$0]  %s4308_s2, 4096, %s23_s16, [#allocation5], %s3248_s25, %s3248_s25, %s3249_s26  }
  0x12   :  { %3243 = dma.done.wait [#allocation5], 4096  }
  0x13   :  { %3244 = vsyncadd [#allocation5], 4294963200  ;;  %v170_v0 = vstv %s4306_s0  ;;  %v36_v1 = vld [vmem:[#allocation4 + $0x10] sm:$0xff]  ;;  %v3296_v2 = vld [vmem:[%s4309_s3] ss:$0 sm:$0xff]  ;;  %v3250_v41 = vmov 0  }
  0x14   :  { %3197 = vrcp.f32 %v170_v0  ;;  %v34_v3 = vld [vmem:[#allocation4] sm:$0xff]  ;;  %v75_v4 = vmul.f32 %v3296_v2, %v36_v1  ;;  %v37_v6 = vld [vmem:[#allocation4 + $0x18] sm:$0xff]  ;;  %v35_v7 = vld [vmem:[#allocation4 + $0x8] sm:$0xff]  ;;  %3195 = vset.pattern.permute.xlu0 %v3250_v41  ;;  %3196 = vset.pattern.permute.xlu1 %v3250_v41  ;;  %vm2971_vm0 = vcmask 130112   ;;  %vm2978_vm1 = vcmask 195712  }
  0x15   :  { %v73_v5 = vmul.f32 %v3296_v2, %v34_v3  ;;  %v76_v8 = vmul.f32 %v3296_v2, %v37_v6  ;;  %v74_v9 = vmul.f32 %v3296_v2, %v35_v7  ;;  %v39_v11 = vld [vmem:[#allocation4 + $0x28] sm:$0xff]  ;;  %v38_v12 = vld [vmem:[#allocation4 + $0x20] sm:$0xff]  ;;  %v41_v15 = vld [vmem:[#allocation4 + $0x38] sm:$0xff]  ;;  %v3251_v6 = vmov 1966171168  }
  0x16   :  { %109 = vadd.xlane.f32.xlu1 %v75_v4  ;;  %v78_v13 = vmul.f32 %v3296_v2, %v39_v11  ;;  %v77_v14 = vmul.f32 %v3296_v2, %v38_v12  ;;  %v40_v16 = vld [vmem:[#allocation4 + $0x30] sm:$0xff]  ;;  %v80_v17 = vmul.f32 %v3296_v2, %v41_v15  ;;  %v43_v19 = vld [vmem:[#allocation4 + $0x48] sm:$0xff]  ;;  %v42_v20 = vld [vmem:[#allocation4 + $0x40] sm:$0xff]  ;;  %v1301_v7 = vunpack.c.l.s4 %v3251_v6 }
  0x17   :  { %105 = vadd.xlane.f32.xlu0 %v73_v5  ;;  %v79_v18 = vmul.f32 %v3296_v2, %v40_v16  ;;  %v82_v21 = vmul.f32 %v3296_v2, %v43_v19  ;;  %v81_v22 = vmul.f32 %v3296_v2, %v42_v20  ;;  %v45_v23 = vld [vmem:[#allocation4 + $0x58] sm:$0xff]  ;;  %v44_v24 = vld [vmem:[#allocation4 + $0x50] sm:$0xff]  ;;  %v47_v27 = vld [vmem:[#allocation4 + $0x68] sm:$0xff]  ;;  %v272_v5 = vlaneseq }
  0x18   :  { %v84_v25 = vmul.f32 %v3296_v2, %v45_v23  ;;  %v83_v26 = vmul.f32 %v3296_v2, %v44_v24  ;;  %v46_v28 = vld [vmem:[#allocation4 + $0x60] sm:$0xff]  ;;  %v86_v29 = vmul.f32 %v3296_v2, %v47_v27  ;;  %v49_v31 = vld [vmem:[#allocation4 + $0x78] sm:$0xff]  ;;  %v48_v32 = vld [vmem:[#allocation4 + $0x70] sm:$0xff]  ;;  %vm2985_vm2 = vcmask 261312  }
  0x19   :  { %v85_v30 = vmul.f32 %v3296_v2, %v46_v28  ;;  %v88_v33 = vmul.f32 %v3296_v2, %v49_v31  ;;  %v87_v34 = vmul.f32 %v3296_v2, %v48_v32  ;;  %v51_v35 = vld [vmem:[#allocation4 + $0x88] sm:$0xff]  ;;  %v50_v36 = vld [vmem:[#allocation4 + $0x80] sm:$0xff]  ;;  %v53_v39 = vld [vmem:[#allocation4 + $0x98] sm:$0xff]  ;;  %vm2992_vm3 = vcmask 326912  }
  0x1a   :  { %111 = vadd.xlane.f32.xlu1 %v76_v8  ;;  %v90_v37 = vmul.f32 %v3296_v2, %v51_v35  ;;  %v89_v38 = vmul.f32 %v3296_v2, %v50_v36  ;;  %v52_v40 = vld [vmem:[#allocation4 + $0x90] sm:$0xff]  ;;  %v92_v42 = vmul.f32 %v3296_v2, %v53_v39  ;;  %v55_v44 = vld [vmem:[#allocation4 + $0xa8] sm:$0xff]  ;;  %v54_v45 = vld [vmem:[#allocation4 + $0xa0] sm:$0xff]  ;;  %v3331_v8 = vshrl.u32 %v272_v5, 7 }
  0x1b   :  { %107 = vadd.xlane.f32.xlu0 %v74_v9  ;;  %v91_v43 = vmul.f32 %v3296_v2, %v52_v40  ;;  %v94_v46 = vmul.f32 %v3296_v2, %v55_v44  ;;  %v93_v47 = vmul.f32 %v3296_v2, %v54_v45  ;;  %v57_v48 = vld [vmem:[#allocation4 + $0xb8] sm:$0xff]  ;;  %v56_v49 = vld [vmem:[#allocation4 + $0xb0] sm:$0xff]  ;;  %v59_v52 = vld [vmem:[#allocation4 + $0xc8] sm:$0xff]  ;;  %v3336_v9 = vstv %s4307_s1  ;;  %s3252_s1 = smov [#allocation7]  }
  0x1c   :  { %v96_v50 = vmul.f32 %v3296_v2, %v57_v48  ;;  %v95_v51 = vmul.f32 %v3296_v2, %v56_v49  ;;  %v58_v53 = vld [vmem:[#allocation4 + $0xc0] sm:$0xff]  ;;  %v98_v54 = vmul.f32 %v3296_v2, %v59_v52  ;;  %v61_v56 = vld [vmem:[#allocation4 + $0xd8] sm:$0xff]  ;;  %v60_v57 = vld [vmem:[#allocation4 + $0xd0] sm:$0xff]  ;;  %v3343_v15 = vsub.s32 0, %v3331_v8  ;;  %s3177_s7 = sshll.u32 %s3252_s1, 4  ;;  %s3178_s7 = int_to_ptr.vmem [resolvable:$true] %s3177_s7 }
  0x1d   :  { %v97_v55 = vmul.f32 %v3296_v2, %v58_v53  ;;  %v100_v58 = vmul.f32 %v3296_v2, %v61_v56  ;;  %v99_v59 = vmul.f32 %v3296_v2, %v60_v57  ;;  %v63_v60 = vld [vmem:[#allocation4 + $0xe8] sm:$0xff]  ;;  %v62_v61 = vld [vmem:[#allocation4 + $0xe0] sm:$0xff]  ;;  %v65_v0 = vld [vmem:[#allocation4 + $0xf8] sm:$0xff]  ;;  %v3346_v16 = vsub.s32 1, %v3331_v8  ;;  %s3221_s8 = scalar_lea.vmem %s3178_s7, 32  ;;  %p3226_p9 = scmp.lt.s32.totalorder %s3178_s7, %s3178_s7 }
  0x1e   :  { %v3198_v10 = vpop.eup %3197  ;;  %115 = vadd.xlane.f32.xlu1 %v78_v13  ;;  %v102_v62 = vmul.f32 %v3296_v2, %v63_v60  ;;  %v101_v63 = vmul.f32 %v3296_v2, %v62_v61  ;;  %v64_v1 = vld [vmem:[#allocation4 + $0xf0] sm:$0xff]  ;;  %v104_v3 = vmul.f32 %v3296_v2, %v65_v0  ;;  %v1302_v13 = vunpack.c.0.s8 %v1301_v7  ;;  %p3222_p8 = scmp.ne.s32.totalorder %s3178_s7, %s3221_s8  ;;  %p3227_p10 = scmp.lt.s32.totalorder %s3221_s8, %s3221_s8 }
  0x1f   :  { %3187 = vpush %v3198_v10  ;;  %113 = vadd.xlane.f32.xlu0 %v77_v14  ;;  %v103_v4 = vmul.f32 %v3296_v2, %v64_v1  ;;  %v3355_v19 = vsub.s32 4, %v3331_v8  ;;  %v3358_v20 = vsub.s32 5, %v3331_v8  ;;  %v3365_v23 = vsub.s32 7, %v3331_v8 }
  0x20   :  { %v3371_v27 = vsub.s32 %v1302_v13, %v3331_v8  ;;  %vm2999_vm4 = vcmask 392512   ;;  %vm3006_vm5 = vcmask 458112   ;;  %vm3013_vm6 = vcmask 523712   ;;  %p3228_p11 = por %p3227_p10, %p3226_p9 }
  0x21   :  { %vm3020_vm7 = vcmask 589312   ;;  %vm3027_vm8 = vcmask 654912   ;;  %vm3034_vm9 = vcmask 720512   ;;  %vm3041_vm10 = vcmask 786112  }
  0x22   :  { %119 = vadd.xlane.f32.xlu1 %v80_v17  ;;  %v3349_v17 = vsub.s32 2, %v3331_v8  ;;  %vm3048_vm11 = vcmask 851712   ;;  %vm3055_vm12 = vcmask 917312   ;;  %vm3062_vm13 = vcmask 982912   ;;  %p3229_p12 = pnand %p3228_p11, %p3222_p8 }
  0x23   :  { %117 = vadd.xlane.f32.xlu0 %v79_v18  ;;  %v3352_v18 = vsub.s32 3, %v3331_v8  ;;  %vm3069_vm14 = vcmask 1048512   ;;  %vm3168_vm15 = vcmp.lt.s32.totalorder %v272_v5, 256 }
  0x26   :  { %123 = vadd.xlane.f32.xlu1 %v82_v21 }
  0x27   :  { %121 = vadd.xlane.f32.xlu0 %v81_v22  ;;  %v3362_v22 = vsub.s32 6, %v3331_v8 }
  0x2a   :  { %127 = vadd.xlane.f32.xlu1 %v84_v25 }
  0x2b   :  { %125 = vadd.xlane.f32.xlu0 %v83_v26 }
  0x2e   :  { %131 = vadd.xlane.f32.xlu1 %v86_v29 }
  0x2f   :  { %129 = vadd.xlane.f32.xlu0 %v85_v30 }
  0x32   :  { %135 = vadd.xlane.f32.xlu1 %v88_v33 }
  0x33   :  { %133 = vadd.xlane.f32.xlu0 %v87_v34 }
  0x36   :  { %139 = vadd.xlane.f32.xlu1 %v90_v37 }
  0x37   :  { %137 = vadd.xlane.f32.xlu0 %v89_v38 }
  0x3a   :  { %143 = vadd.xlane.f32.xlu1 %v92_v42 }
  0x3b   :  { %141 = vadd.xlane.f32.xlu0 %v91_v43 }
  0x3e   :  { %147 = vadd.xlane.f32.xlu1 %v94_v46 }
  0x3f   :  { %145 = vadd.xlane.f32.xlu0 %v93_v47 }
  0x42   :  { %151 = vadd.xlane.f32.xlu1 %v96_v50 }
  0x43   :  { %149 = vadd.xlane.f32.xlu0 %v95_v51 }
  0x46   :  { %155 = vadd.xlane.f32.xlu1 %v98_v54 }
  0x47   :  { %153 = vadd.xlane.f32.xlu0 %v97_v55 }
  0x4a   :  { %159 = vadd.xlane.f32.xlu1 %v100_v58 }
  0x4b   :  { %157 = vadd.xlane.f32.xlu0 %v99_v59 }
  0x4e   :  { %163 = vadd.xlane.f32.xlu1 %v102_v62 }
  0x4f   :  { %161 = vadd.xlane.f32.xlu0 %v101_v63 }
  0x50   :  { %s3188_s0 = spop %3187 }
  0x51   :  { %v3338_v12 = vstv %s3188_s0 }
  0x52   :  { %167 = vadd.xlane.f32.xlu1 %v104_v3 }
  0x53   :  { %165 = vadd.xlane.f32.xlu0 %v103_v4 }
  0xa3   :  { %v110_v10 = vpop.xlane.xlu1 %109 }
  0xa4   :  { %v106_v11 = vpop.xlane.xlu0 %105  ;;  %v177_v2 = vadd.f32 %v3336_v9, %v110_v10 }
  0xa5   :  { %v175_v14 = vadd.f32 %v3336_v9, %v106_v11 }
  0xa6   :  { %v3368_v24 = vmul.f32 %v3338_v12, %v177_v2 }
  0xa7   :  { %v208_v21 = vmul.f32 %v3338_v12, %v175_v14  ;;  %v112_v25 = vpop.xlane.xlu1 %111 }
  0xa8   :  { %v108_v26 = vpop.xlane.xlu0 %107  ;;  %v178_v28 = vadd.f32 %v3336_v9, %v112_v25  ;;  %v339_v45 = vrot.slane %v3368_v24, %v3343_v15 }
  0xa9   :  { %v176_v29 = vadd.f32 %v3336_v9, %v108_v26  ;;  %v275_v30 = vrot.slane %v208_v21, %v3343_v15  ;;  %v279_v31 = vrot.slane %v208_v21, %v3346_v16  ;;  %v283_v32 = vrot.slane %v208_v21, %v3349_v17 }
  0xaa   :  { %v287_v33 = vrot.slane %v208_v21, %v3352_v18  ;;  %v291_v34 = vrot.slane %v208_v21, %v3355_v19  ;;  %v295_v35 = vrot.slane %v208_v21, %v3358_v20  ;;  %v3382_v36 = vmul.f32 %v3338_v12, %v178_v28 }
  0xab   :  { %v209_v37 = vmul.f32 %v3338_v12, %v176_v29  ;;  %v299_v38 = vrot.slane %v208_v21, %v3362_v22  ;;  %v303_v39 = vrot.slane %v208_v21, %v3365_v23  ;;  %v116_v40 = vpop.xlane.xlu1 %115  ;;  %v1296_v42 = vcombine.low %v275_v30, %v279_v31 }
  0xac   :  { %v114_v41 = vpop.xlane.xlu0 %113  ;;  %v1297_v43 = vcombine.low %v283_v32, %v287_v33  ;;  %v1298_v44 = vcombine.low %v291_v34, %v295_v35  ;;  %v180_v46 = vadd.f32 %v3336_v9, %v116_v40  ;;  %v343_v31 = vrot.slane %v3368_v24, %v3346_v16 }
  0xad   :  { %v179_v47 = vadd.f32 %v3336_v9, %v114_v41  ;;  %v1299_v48 = vcombine.low %v299_v38, %v303_v39  ;;  %v307_v49 = vrot.slane %v209_v37, %v3343_v15  ;;  %v1306_v50 = vrot.slane %v1296_v42, %v3371_v27 }
  0xae   :  { %v1313_v51 = vrot.slane %v1297_v43, %v3371_v27  ;;  %v1320_v52 = vrot.slane %v1298_v44, %v3371_v27  ;;  %v311_v53 = vrot.slane %v209_v37, %v3346_v16  ;;  %v3397_v54 = vmul.f32 %v3338_v12, %v180_v46 }
  0xaf   :  { %v3400_v55 = vmul.f32 %v3338_v12, %v179_v47  ;;  %v1327_v56 = vrot.slane %v1299_v48, %v3371_v27  ;;  %v315_v57 = vrot.slane %v209_v37, %v3349_v17  ;;  %v120_v58 = vpop.xlane.xlu1 %119  ;;  %v319_v61 = vrot.slane %v209_v37, %v3352_v18 }
  0xb0   :  { %v118_v59 = vpop.xlane.xlu0 %117  ;;  %v1328_v60 = vcombine.low %v1306_v50, %v1313_v51  ;;  %v323_v62 = vrot.slane %v209_v37, %v3355_v19  ;;  %v327_v63 = vrot.slane %v209_v37, %v3358_v20  ;;  %v182_v0 = vadd.f32 %v3336_v9, %v120_v58 }
  0xb1   :  { %v181_v1 = vadd.f32 %v3336_v9, %v118_v59  ;;  %v1329_v3 = vcombine.low %v1320_v52, %v1327_v56  ;;  %v331_v4 = vrot.slane %v209_v37, %v3362_v22  ;;  %v335_v7 = vrot.slane %v209_v37, %v3365_v23 }
  0xb2   :  { %v1336_v6 = vrot.slane %v1328_v60, %v3371_v27  ;;  %v1345_v10 = vcombine.low %v307_v49, %v311_v53  ;;  %v1346_v11 = vcombine.low %v315_v57, %v319_v61  ;;  %v3413_v13 = vmul.f32 %v3338_v12, %v182_v0 }
  0xb3   :  { %v3416_v2 = vmul.f32 %v3338_v12, %v181_v1  ;;  %v1343_v14 = vrot.slane %v1329_v3, %v3371_v27  ;;  %v1347_v21 = vcombine.low %v323_v62, %v327_v63  ;;  %v124_v25 = vpop.xlane.xlu1 %123  ;;  %v1348_v28 = vcombine.low %v331_v4, %v335_v7 }
  0xb4   :  { %v122_v26 = vpop.xlane.xlu0 %121  ;;  %v1355_v29 = vrot.slane %v1345_v10, %v3371_v27  ;;  %v1362_v30 = vrot.slane %v1346_v11, %v3371_v27  ;;  %v184_v32 = vadd.f32 %v3336_v9, %v124_v25  ;;  %v347_v39 = vrot.slane %v3368_v24, %v3349_v17 }
  0xb5   :  { %v183_v33 = vadd.f32 %v3336_v9, %v122_v26  ;;  %v1344_v34 = vcombine.low %v1336_v6, %v1343_v14  ;;  %v1369_v35 = vrot.slane %v1347_v21, %v3371_v27  ;;  %v1376_v37 = vrot.slane %v1348_v28, %v3371_v27 }
  0xb6   :  { %v1377_v38 = vcombine.low %v1355_v29, %v1362_v30  ;;  %v351_v40 = vrot.slane %v3368_v24, %v3352_v18  ;;  %v3432_v41 = vmul.f32 %v3338_v12, %v184_v32  ;;  %v355_v43 = vrot.slane %v3368_v24, %v3355_v19 }
  0xb7   :  { %v3435_v42 = vmul.f32 %v3338_v12, %v183_v33  ;;  %2865 = vperm.xlu0 %3195, %v1344_v34   ;;  %v359_v44 = vrot.slane %v3368_v24, %v3358_v20  ;;  %v128_v46 = vpop.xlane.xlu1 %127  ;;  %v1378_v48 = vcombine.low %v1369_v35, %v1376_v37  ;;  %v363_v50 = vrot.slane %v3368_v24, %v3362_v22 }
  0xb8   :  { %v126_v47 = vpop.xlane.xlu0 %125  ;;  %v1385_v49 = vrot.slane %v1377_v38, %v3371_v27  ;;  %v367_v51 = vrot.slane %v3368_v24, %v3365_v23  ;;  %v186_v52 = vadd.f32 %v3336_v9, %v128_v46  ;;  %v1394_v56 = vcombine.low %v339_v45, %v343_v31 }
  0xb9   :  { %v185_v53 = vadd.f32 %v3336_v9, %v126_v47  ;;  %v1395_v57 = vcombine.low %v347_v39, %v351_v40  ;;  %v1392_v58 = vrot.slane %v1378_v48, %v3371_v27  ;;  %v1396_v59 = vcombine.low %v355_v43, %v359_v44 }
  0xba   :  { %v1397_v60 = vcombine.low %v363_v50, %v367_v51  ;;  %v371_v61 = vrot.slane %v3382_v36, %v3343_v15  ;;  %v3452_v62 = vmul.f32 %v3338_v12, %v186_v52  ;;  %v1404_v24 = vrot.slane %v1394_v56, %v3371_v27 }
  0xbb   :  { %v3455_v63 = vmul.f32 %v3338_v12, %v185_v53  ;;  %v1411_v0 = vrot.slane %v1395_v57, %v3371_v27  ;;  %v1393_v1 = vcombine.low %v1385_v49, %v1392_v58  ;;  %v132_v45 = vpop.xlane.xlu1 %131  ;;  %v1418_v4 = vrot.slane %v1396_v59, %v3371_v27 }
  0xbc   :  { %v130_v3 = vpop.xlane.xlu0 %129  ;;  %v1425_v6 = vrot.slane %v1397_v60, %v3371_v27  ;;  %v375_v7 = vrot.slane %v3382_v36, %v3346_v16  ;;  %v188_v10 = vadd.f32 %v3336_v9, %v132_v45  ;;  %v379_v21 = vrot.slane %v3382_v36, %v3349_v17 }
  0xbd   :  { %v187_v11 = vadd.f32 %v3336_v9, %v130_v3  ;;  %v1426_v14 = vcombine.low %v1404_v24, %v1411_v0  ;;  %2868 = vperm.xlu1 %3196, %v1393_v1   ;;  %v383_v26 = vrot.slane %v3382_v36, %v3352_v18  ;;  %v387_v28 = vrot.slane %v3382_v36, %v3355_v19 }
  0xbe   :  { %v1427_v25 = vcombine.low %v1418_v4, %v1425_v6  ;;  %v391_v29 = vrot.slane %v3382_v36, %v3358_v20  ;;  %v3474_v30 = vmul.f32 %v3338_v12, %v188_v10  ;;  %v395_v33 = vrot.slane %v3382_v36, %v3362_v22 }
  0xbf   :  { %v3477_v31 = vmul.f32 %v3338_v12, %v187_v11  ;;  %v1434_v32 = vrot.slane %v1426_v14, %v3371_v27  ;;  %v136_v35 = vpop.xlane.xlu1 %135  ;;  %v399_v38 = vrot.slane %v3382_v36, %v3365_v23  ;;  %v1443_v39 = vcombine.low %v371_v61, %v375_v7 }
  0xc0   :  { %v1441_v34 = vrot.slane %v1427_v25, %v3371_v27  ;;  %v134_v37 = vpop.xlane.xlu0 %133  ;;  %v1444_v40 = vcombine.low %v379_v21, %v383_v26  ;;  %v190_v43 = vadd.f32 %v3336_v9, %v136_v35  ;;  %v1445_v46 = vcombine.low %v387_v28, %v391_v29 }
  0xc1   :  { %v189_v44 = vadd.f32 %v3336_v9, %v134_v37  ;;  %v563_v47 = vrot.slane %v3432_v41, %v3343_v15  ;;  %v1446_v49 = vcombine.low %v395_v33, %v399_v38  ;;  %v1453_v50 = vrot.slane %v1443_v39, %v3371_v27 }
  0xc2   :  { %v1442_v48 = vcombine.low %v1434_v32, %v1441_v34  ;;  %v1460_v51 = vrot.slane %v1444_v40, %v3371_v27  ;;  %v3492_v52 = vmul.f32 %v3338_v12, %v190_v43  ;;  %v1467_v53 = vrot.slane %v1445_v46, %v3371_v27 }
  0xc3   :  { %v3495_v36 = vmul.f32 %v3338_v12, %v189_v44  ;;  %v567_v56 = vrot.slane %v3432_v41, %v3346_v16  ;;  %v1474_v57 = vrot.slane %v1446_v49, %v3371_v27  ;;  %v140_v59 = vpop.xlane.xlu1 %139  ;;  %v571_v61 = vrot.slane %v3432_v41, %v3349_v17 }
  0xc4   :  { %2871 = vperm.xlu1 %3196, %v1442_v48   ;;  %v1475_v58 = vcombine.low %v1453_v50, %v1460_v51  ;;  %v138_v60 = vpop.xlane.xlu0 %137  ;;  %v575_v24 = vrot.slane %v3432_v41, %v3352_v18  ;;  %v192_v0 = vadd.f32 %v3336_v9, %v140_v59  ;;  %v579_v45 = vrot.slane %v3432_v41, %v3355_v19 }
  0xc5   :  { %v191_v1 = vadd.f32 %v3336_v9, %v138_v60  ;;  %v583_v3 = vrot.slane %v3432_v41, %v3358_v20  ;;  %v1476_v4 = vcombine.low %v1467_v53, %v1474_v57  ;;  %v587_v7 = vrot.slane %v3432_v41, %v3362_v22 }
  0xc6   :  { %v1483_v6 = vrot.slane %v1475_v58, %v3371_v27  ;;  %v591_v10 = vrot.slane %v3432_v41, %v3365_v23  ;;  %v3517_v11 = vmul.f32 %v3338_v12, %v192_v0  ;;  %v1737_v21 = vcombine.low %v563_v47, %v567_v56 }
  0xc7   :  { %v3520_v14 = vmul.f32 %v3338_v12, %v191_v1  ;;  %v1738_v25 = vcombine.low %v571_v61, %v575_v24  ;;  %v1490_v26 = vrot.slane %v1476_v4, %v3371_v27  ;;  %v1739_v28 = vcombine.low %v579_v45, %v583_v3  ;;  %v144_v43 = vpop.xlane.xlu1 %143 }
  0xc8   :  { %v1740_v29 = vcombine.low %v587_v7, %v591_v10  ;;  %v403_v32 = vrot.slane %v3400_v55, %v3343_v15  ;;  %v1747_v33 = vrot.slane %v1737_v21, %v3371_v27  ;;  %v407_v41 = vrot.slane %v3400_v55, %v3346_v16  ;;  %v142_v44 = vpop.xlane.xlu0 %141 }
  0xc9   :  { %v1754_v34 = vrot.slane %v1738_v25, %v3371_v27  ;;  %v411_v35 = vrot.slane %v3400_v55, %v3349_v17  ;;  %v1491_v37 = vcombine.low %v1483_v6, %v1490_v26  ;;  %v1761_v38 = vrot.slane %v1739_v28, %v3371_v27 }
  0xca   :  { %v1768_v39 = vrot.slane %v1740_v29, %v3371_v27  ;;  %v415_v40 = vrot.slane %v3400_v55, %v3352_v18  ;;  %v419_v47 = vrot.slane %v3400_v55, %v3355_v19  ;;  %v423_v48 = vrot.slane %v3400_v55, %v3358_v20 }
  0xcb   :  { %v1769_v46 = vcombine.low %v1747_v33, %v1754_v34  ;;  %v427_v49 = vrot.slane %v3400_v55, %v3362_v22  ;;  %2874 = vperm.xlu1 %3196, %v1491_v37   ;;  %v431_v51 = vrot.slane %v3400_v55, %v3365_v23  ;;  %v1492_v53 = vcombine.low %v403_v32, %v407_v41  ;;  %v148_v25 = vpop.xlane.xlu1 %147 }
  0xcc   :  { %v1770_v50 = vcombine.low %v1761_v38, %v1768_v39  ;;  %v1493_v56 = vcombine.low %v411_v35, %v415_v40  ;;  %v1494_v58 = vcombine.low %v419_v47, %v423_v48  ;;  %v194_v59 = vadd.f32 %v3336_v9, %v144_v43  ;;  %v146_v33 = vpop.xlane.xlu0 %145 }
  0xcd   :  { %v1777_v57 = vrot.slane %v1769_v46, %v3371_v27  ;;  %v193_v60 = vadd.f32 %v3336_v9, %v142_v44  ;;  %v1495_v24 = vcombine.low %v427_v49, %v431_v51  ;;  %v1502_v0 = vrot.slane %v1492_v53, %v3371_v27 }
  0xce   :  { %v1784_v61 = vrot.slane %v1770_v50, %v3371_v27  ;;  %v1509_v1 = vrot.slane %v1493_v56, %v3371_v27  ;;  %v1516_v45 = vrot.slane %v1494_v58, %v3371_v27  ;;  %v3551_v55 = vmul.f32 %v3338_v12, %v194_v59 }
  0xcf   :  { %v3554_v3 = vmul.f32 %v3338_v12, %v193_v60  ;;  %v435_v4 = vrot.slane %v3397_v54, %v3343_v15  ;;  %v1523_v7 = vrot.slane %v1495_v24, %v3371_v27  ;;  %v439_v21 = vrot.slane %v3397_v54, %v3346_v16  ;;  %v152_v59 = vpop.xlane.xlu1 %151 }
  0xd0   :  { %v1785_v6 = vcombine.low %v1777_v57, %v1784_v61  ;;  %v1524_v10 = vcombine.low %v1502_v0, %v1509_v1  ;;  %v443_v26 = vrot.slane %v3397_v54, %v3349_v17  ;;  %v447_v28 = vrot.slane %v3397_v54, %v3352_v18  ;;  %v150_v1 = vpop.xlane.xlu0 %149 }
  0xd1   :  { %v451_v29 = vrot.slane %v3397_v54, %v3355_v19  ;;  %v455_v32 = vrot.slane %v3397_v54, %v3358_v20  ;;  %v1525_v34 = vcombine.low %v1516_v45, %v1523_v7  ;;  %v459_v35 = vrot.slane %v3397_v54, %v3362_v22 }
  0xd2   :  { %2892 = vperm.xlu0 %3195, %v1785_v6   ;;  %v1532_v41 = vrot.slane %v1524_v10, %v3371_v27  ;;  %v463_v37 = vrot.slane %v3397_v54, %v3365_v23  ;;  %v1541_v38 = vcombine.low %v435_v4, %v439_v21  ;;  %v1542_v39 = vcombine.low %v443_v26, %v447_v28 }
  0xd3   :  { %v1543_v40 = vcombine.low %v451_v29, %v455_v32  ;;  %v196_v43 = vadd.f32 %v3336_v9, %v148_v25  ;;  %v1539_v44 = vrot.slane %v1525_v34, %v3371_v27  ;;  %v195_v47 = vadd.f32 %v3336_v9, %v146_v33 }
  0xd4   :  { %v1544_v46 = vcombine.low %v459_v35, %v463_v37  ;;  %v467_v48 = vrot.slane %v3416_v2, %v3343_v15  ;;  %v1551_v49 = vrot.slane %v1541_v38, %v3371_v27  ;;  %v1558_v50 = vrot.slane %v1542_v39, %v3371_v27 }
  0xd5   :  { %v1565_v51 = vrot.slane %v1543_v40, %v3371_v27  ;;  %v3583_v54 = vmul.f32 %v3338_v12, %v196_v43  ;;  %v1540_v53 = vcombine.low %v1532_v41, %v1539_v44  ;;  %v3587_v57 = vmul.f32 %v3338_v12, %v195_v47 }
  0xd6   :  { %v1572_v56 = vrot.slane %v1544_v46, %v3371_v27  ;;  %v471_v58 = vrot.slane %v3416_v2, %v3346_v16  ;;  %v1573_v60 = vcombine.low %v1551_v49, %v1558_v50  ;;  %v475_v61 = vrot.slane %v3416_v2, %v3349_v17  ;;  %v154_v49 = vpop.xlane.xlu0 %153 }
  0xd7   :  { %v479_v24 = vrot.slane %v3416_v2, %v3352_v18  ;;  %v483_v0 = vrot.slane %v3416_v2, %v3355_v19  ;;  %2877 = vperm.xlu1 %3196, %v1540_v53   ;;  %v487_v4 = vrot.slane %v3416_v2, %v3358_v20  ;;  %v491_v6 = vrot.slane %v3416_v2, %v3362_v22 }
  0xd8   :  { %v1574_v45 = vcombine.low %v1565_v51, %v1572_v56  ;;  %v495_v7 = vrot.slane %v3416_v2, %v3365_v23  ;;  %v1581_v10 = vrot.slane %v1573_v60, %v3371_v27  ;;  %v1590_v21 = vcombine.low %v467_v48, %v471_v58  ;;  %v156_v48 = vpop.xlane.xlu1 %155 }
  0xd9   :  { %v1591_v25 = vcombine.low %v475_v61, %v479_v24  ;;  %v198_v26 = vadd.f32 %v3336_v9, %v152_v59  ;;  %v1592_v29 = vcombine.low %v483_v0, %v487_v4  ;;  %v197_v33 = vadd.f32 %v3336_v9, %v150_v1 }
  0xda   :  { %v1588_v28 = vrot.slane %v1574_v45, %v3371_v27  ;;  %v1593_v32 = vcombine.low %v491_v6, %v495_v7  ;;  %v1600_v34 = vrot.slane %v1590_v21, %v3371_v27  ;;  %v499_v2 = vrot.slane %v3413_v13, %v3343_v15 }
  0xdb   :  { %v1607_v41 = vrot.slane %v1591_v25, %v3371_v27  ;;  %v3610_v35 = vmul.f32 %v3338_v12, %v198_v26  ;;  %v1614_v38 = vrot.slane %v1592_v29, %v3371_v27  ;;  %v3617_v40 = vmul.f32 %v3338_v12, %v197_v33 }
  0xdc   :  { %v1589_v37 = vcombine.low %v1581_v10, %v1588_v28  ;;  %v1621_v39 = vrot.slane %v1593_v32, %v3371_v27  ;;  %v503_v44 = vrot.slane %v3413_v13, %v3346_v16  ;;  %v507_v46 = vrot.slane %v3413_v13, %v3349_v17 }
  0xdd   :  { %v1622_v43 = vcombine.low %v1600_v34, %v1607_v41  ;;  %v511_v47 = vrot.slane %v3413_v13, %v3352_v18  ;;  %v515_v51 = vrot.slane %v3413_v13, %v3355_v19  ;;  %v519_v53 = vrot.slane %v3413_v13, %v3358_v20 }
  0xde   :  { %2880 = vperm.xlu1 %3196, %v1589_v37   ;;  %v1623_v50 = vcombine.low %v1614_v38, %v1621_v39  ;;  %v523_v56 = vrot.slane %v3413_v13, %v3362_v22  ;;  %v527_v59 = vrot.slane %v3413_v13, %v3365_v23  ;;  %v1639_v60 = vcombine.low %v499_v2, %v503_v44 }
  0xdf   :  { %v1630_v58 = vrot.slane %v1622_v43, %v3371_v27  ;;  %v1640_v61 = vcombine.low %v507_v46, %v511_v47  ;;  %v1641_v0 = vcombine.low %v515_v51, %v519_v53  ;;  %v200_v1 = vadd.f32 %v3336_v9, %v156_v48 }
  0xe0   :  { %v1637_v24 = vrot.slane %v1623_v50, %v3371_v27  ;;  %v199_v45 = vadd.f32 %v3336_v9, %v154_v49  ;;  %v1642_v4 = vcombine.low %v523_v56, %v527_v59  ;;  %v1649_v6 = vrot.slane %v1639_v60, %v3371_v27 }
  0xe1   :  { %v1656_v7 = vrot.slane %v1640_v61, %v3371_v27  ;;  %v819_v10 = vrot.slane %v3517_v11, %v3343_v15  ;;  %v1663_v13 = vrot.slane %v1641_v0, %v3371_v27  ;;  %v3643_v25 = vmul.f32 %v3338_v12, %v200_v1  ;;  %v160_v61 = vpop.xlane.xlu1 %159 }
  0xe2   :  { %v1638_v21 = vcombine.low %v1630_v58, %v1637_v24  ;;  %v3646_v26 = vmul.f32 %v3338_v12, %v199_v45  ;;  %v1670_v28 = vrot.slane %v1642_v4, %v3371_v27  ;;  %v823_v32 = vrot.slane %v3517_v11, %v3346_v16  ;;  %v158_v24 = vpop.xlane.xlu0 %157 }
  0xe3   :  { %v1671_v29 = vcombine.low %v1649_v6, %v1656_v7  ;;  %v827_v33 = vrot.slane %v3517_v11, %v3349_v17  ;;  %v831_v34 = vrot.slane %v3517_v11, %v3352_v18  ;;  %v835_v41 = vrot.slane %v3517_v11, %v3355_v19 }
  0xe4   :  { %2883 = vperm.xlu1 %3196, %v1638_v21   ;;  %v839_v2 = vrot.slane %v3517_v11, %v3358_v20  ;;  %v843_v37 = vrot.slane %v3517_v11, %v3362_v22  ;;  %v1672_v38 = vcombine.low %v1663_v13, %v1670_v28  ;;  %v847_v43 = vrot.slane %v3517_v11, %v3365_v23 }
  0xe5   :  { %v1679_v39 = vrot.slane %v1671_v29, %v3371_v27  ;;  %v2129_v44 = vcombine.low %v819_v10, %v823_v32  ;;  %v2130_v46 = vcombine.low %v827_v33, %v831_v34  ;;  %v531_v48 = vrot.slane %v3435_v42, %v3343_v15 }
  0xe6   :  { %v2131_v47 = vcombine.low %v835_v41, %v839_v2  ;;  %v535_v49 = vrot.slane %v3435_v42, %v3346_v16  ;;  %v1686_v50 = vrot.slane %v1672_v38, %v3371_v27  ;;  %v2132_v51 = vcombine.low %v843_v37, %v847_v43 }
  0xe7   :  { %v2139_v53 = vrot.slane %v2129_v44, %v3371_v27  ;;  %v539_v56 = vrot.slane %v3435_v42, %v3349_v17  ;;  %v2146_v58 = vrot.slane %v2130_v46, %v3371_v27  ;;  %v543_v59 = vrot.slane %v3435_v42, %v3352_v18 }
  0xe8   :  { %v2153_v11 = vrot.slane %v2131_v47, %v3371_v27  ;;  %v547_v60 = vrot.slane %v3435_v42, %v3355_v19  ;;  %v1687_v0 = vcombine.low %v1679_v39, %v1686_v50  ;;  %v2160_v1 = vrot.slane %v2132_v51, %v3371_v27 }
  0xe9   :  { %v551_v45 = vrot.slane %v3435_v42, %v3358_v20  ;;  %v555_v4 = vrot.slane %v3435_v42, %v3362_v22  ;;  %v2161_v6 = vcombine.low %v2139_v53, %v2146_v58  ;;  %v559_v7 = vrot.slane %v3435_v42, %v3365_v23 }
  0xea   :  { %v1688_v10 = vcombine.low %v531_v48, %v535_v49  ;;  %v1689_v21 = vcombine.low %v539_v56, %v543_v59  ;;  %2886 = vperm.xlu1 %3196, %v1687_v0   ;;  %v2162_v13 = vcombine.low %v2153_v11, %v2160_v1  ;;  %v202_v29 = vadd.f32 %v3336_v9, %v160_v61 }
  0xeb   :  { %v1690_v28 = vcombine.low %v547_v60, %v551_v45  ;;  %v201_v32 = vadd.f32 %v3336_v9, %v158_v24  ;;  %v2169_v33 = vrot.slane %v2161_v6, %v3371_v27  ;;  %v1691_v34 = vcombine.low %v555_v4, %v559_v7 }
  0xec   :  { %v1698_v41 = vrot.slane %v1688_v10, %v3371_v27  ;;  %v1705_v2 = vrot.slane %v1689_v21, %v3371_v27  ;;  %v2176_v37 = vrot.slane %v2162_v13, %v3371_v27  ;;  %v3693_v38 = vmul.f32 %v3338_v12, %v202_v29  ;;  %v164_v21 = vpop.xlane.xlu1 %163 }
  0xed   :  { %v1712_v42 = vrot.slane %v1690_v28, %v3371_v27  ;;  %v3696_v39 = vmul.f32 %v3338_v12, %v201_v32  ;;  %v1719_v43 = vrot.slane %v1691_v34, %v3371_v27  ;;  %v883_v46 = vrot.slane %v3551_v55, %v3343_v15 }
  0xee   :  { %v1720_v44 = vcombine.low %v1698_v41, %v1705_v2  ;;  %v887_v47 = vrot.slane %v3551_v55, %v3346_v16  ;;  %v2177_v48 = vcombine.low %v2169_v33, %v2176_v37  ;;  %v891_v49 = vrot.slane %v3551_v55, %v3349_v17  ;;  %v162_v33 = vpop.xlane.xlu0 %161 }
  0xef   :  { %v895_v50 = vrot.slane %v3551_v55, %v3352_v18  ;;  %v899_v51 = vrot.slane %v3551_v55, %v3355_v19  ;;  %v1721_v53 = vcombine.low %v1712_v42, %v1719_v43  ;;  %v903_v58 = vrot.slane %v3551_v55, %v3358_v20 }
  0xf0   :  { %v1728_v56 = vrot.slane %v1720_v44, %v3371_v27  ;;  %v907_v11 = vrot.slane %v3551_v55, %v3362_v22  ;;  %2916 = vperm.xlu0 %3195, %v2177_v48   ;;  %v911_v59 = vrot.slane %v3551_v55, %v3365_v23  ;;  %v2227_v60 = vcombine.low %v883_v46, %v887_v47 }
  0xf1   :  { %v2228_v61 = vcombine.low %v891_v49, %v895_v50  ;;  %v787_v24 = vrot.slane %v3520_v14, %v3343_v15  ;;  %v1735_v0 = vrot.slane %v1721_v53, %v3371_v27  ;;  %v2229_v1 = vcombine.low %v899_v51, %v903_v58 }
  0xf2   :  { %v791_v45 = vrot.slane %v3520_v14, %v3346_v16  ;;  %v795_v4 = vrot.slane %v3520_v14, %v3349_v17  ;;  %v2230_v6 = vcombine.low %v907_v11, %v911_v59  ;;  %v2237_v7 = vrot.slane %v2227_v60, %v3371_v27 }
  0xf3   :  { %v2244_v10 = vrot.slane %v2228_v61, %v3371_v27  ;;  %v799_v55 = vrot.slane %v3520_v14, %v3352_v18  ;;  %v1736_v13 = vcombine.low %v1728_v56, %v1735_v0  ;;  %v2251_v28 = vrot.slane %v2229_v1, %v3371_v27 }
  0xf4   :  { %v803_v29 = vrot.slane %v3520_v14, %v3355_v19  ;;  %v807_v32 = vrot.slane %v3520_v14, %v3358_v20  ;;  %v2258_v34 = vrot.slane %v2230_v6, %v3371_v27  ;;  %v811_v2 = vrot.slane %v3520_v14, %v3362_v22 }
  0xf5   :  { %v2259_v41 = vcombine.low %v2237_v7, %v2244_v10  ;;  %v815_v37 = vrot.slane %v3520_v14, %v3365_v23  ;;  %2889 = vperm.xlu1 %3196, %v1736_v13   ;;  %v2080_v42 = vcombine.low %v787_v24, %v791_v45  ;;  %v2081_v43 = vcombine.low %v795_v4, %v799_v55 }
  0xf6   :  { %v2082_v44 = vcombine.low %v803_v29, %v807_v32  ;;  %v204_v46 = vadd.f32 %v3336_v9, %v164_v21  ;;  %v2260_v47 = vcombine.low %v2251_v28, %v2258_v34  ;;  %v203_v50 = vadd.f32 %v3336_v9, %v162_v33 }
  0xf7   :  { %v2267_v48 = vrot.slane %v2259_v41, %v3371_v27  ;;  %v2083_v49 = vcombine.low %v811_v2, %v815_v37  ;;  %v2090_v51 = vrot.slane %v2080_v42, %v3371_v27  ;;  %v2097_v53 = vrot.slane %v2081_v43, %v3371_v27 }
  0xf8   :  { %v2104_v56 = vrot.slane %v2082_v44, %v3371_v27  ;;  %v3744_v14 = vmul.f32 %v3338_v12, %v204_v46  ;;  %v2274_v58 = vrot.slane %v2260_v47, %v3371_v27  ;;  %v3749_v59 = vmul.f32 %v3338_v12, %v203_v50  ;;  %v168_v46 = vpop.xlane.xlu1 %167  ;;  %v166_v47 = vpop.xlane.xlu0 %165 }
  0xf9   :  { %v2111_v11 = vrot.slane %v2083_v49, %v3371_v27  ;;  %v947_v60 = vrot.slane %v3583_v54, %v3343_v15  ;;  %v2112_v61 = vcombine.low %v2090_v51, %v2097_v53  ;;  %v951_v24 = vrot.slane %v3583_v54, %v3346_v16 }
  0xfa   :  { %v955_v0 = vrot.slane %v3583_v54, %v3349_v17  ;;  %v959_v1 = vrot.slane %v3583_v54, %v3352_v18  ;;  %v2275_v45 = vcombine.low %v2267_v48, %v2274_v58  ;;  %v963_v6 = vrot.slane %v3583_v54, %v3355_v19 }
  0xfb   :  { %v2113_v4 = vcombine.low %v2104_v56, %v2111_v11  ;;  %v967_v7 = vrot.slane %v3583_v54, %v3358_v20  ;;  %v2120_v10 = vrot.slane %v2112_v61, %v3371_v27  ;;  %v971_v55 = vrot.slane %v3583_v54, %v3362_v22 }
  0xfc   :  { %v975_v21 = vrot.slane %v3583_v54, %v3365_v23  ;;  %v2325_v13 = vcombine.low %v947_v60, %v951_v24  ;;  %2922 = vperm.xlu0 %3195, %v2275_v45   ;;  %v2326_v29 = vcombine.low %v955_v0, %v959_v1  ;;  %v851_v33 = vrot.slane %v3554_v3, %v3343_v15 }
  0xfd   :  { %v2127_v28 = vrot.slane %v2113_v4, %v3371_v27  ;;  %v2327_v32 = vcombine.low %v963_v6, %v967_v7  ;;  %v855_v2 = vrot.slane %v3554_v3, %v3346_v16  ;;  %v859_v37 = vrot.slane %v3554_v3, %v3349_v17 }
  0xfe   :  { %v2328_v34 = vcombine.low %v971_v55, %v975_v21  ;;  %v2335_v41 = vrot.slane %v2325_v13, %v3371_v27  ;;  %v2342_v54 = vrot.slane %v2326_v29, %v3371_v27  ;;  %v863_v44 = vrot.slane %v3554_v3, %v3352_v18 }
  0xff   :  { %v2128_v42 = vcombine.low %v2120_v10, %v2127_v28  ;;  %v2349_v43 = vrot.slane %v2327_v32, %v3371_v27  ;;  %v867_v49 = vrot.slane %v3554_v3, %v3355_v19  ;;  %v871_v50 = vrot.slane %v3554_v3, %v3358_v20 }
 0x100   :  { %v2356_v48 = vrot.slane %v2328_v34, %v3371_v27  ;;  %v875_v51 = vrot.slane %v3554_v3, %v3362_v22  ;;  %v2357_v53 = vcombine.low %v2335_v41, %v2342_v54  ;;  %v879_v56 = vrot.slane %v3554_v3, %v3365_v23 }
 0x101   :  { %2913 = vperm.xlu1 %3196, %v2128_v42   ;;  %v2178_v58 = vcombine.low %v851_v33, %v855_v2  ;;  %v2179_v11 = vcombine.low %v859_v37, %v863_v44  ;;  %v2180_v61 = vcombine.low %v867_v49, %v871_v50  ;;  %v206_v24 = vadd.f32 %v3336_v9, %v168_v46 }
 0x102   :  { %v2358_v60 = vcombine.low %v2349_v43, %v2356_v48  ;;  %v205_v0 = vadd.f32 %v3336_v9, %v166_v47  ;;  %v2365_v1 = vrot.slane %v2357_v53, %v3371_v27  ;;  %v2181_v45 = vcombine.low %v875_v51, %v879_v56 }
 0x103   :  { %v2188_v4 = vrot.slane %v2178_v58, %v3371_v27  ;;  %v2195_v6 = vrot.slane %v2179_v11, %v3371_v27  ;;  %v2202_v10 = vrot.slane %v2180_v61, %v3371_v27  ;;  %v3797_v3 = vmul.f32 %v3338_v12, %v206_v24 }
 0x104   :  { %v2372_v7 = vrot.slane %v2358_v60, %v3371_v27  ;;  %v3800_v55 = vmul.f32 %v3338_v12, %v205_v0  ;;  %v2209_v21 = vrot.slane %v2181_v45, %v3371_v27  ;;  %v1011_v13 = vrot.slane %v3610_v35, %v3343_v15 }
 0x105   :  { %v2210_v9 = vcombine.low %v2188_v4, %v2195_v6  ;;  %v1015_v28 = vrot.slane %v3610_v35, %v3346_v16  ;;  %v1019_v32 = vrot.slane %v3610_v35, %v3349_v17  ;;  %v1023_v33 = vrot.slane %v3610_v35, %v3352_v18 }
 0x106   :  { %v2373_v29 = vcombine.low %v2365_v1, %v2372_v7  ;;  %v1027_v12 = vrot.slane %v3610_v35, %v3355_v19  ;;  %v2211_v34 = vcombine.low %v2202_v10, %v2209_v21  ;;  %v1031_v2 = vrot.slane %v3610_v35, %v3358_v20 }
 0x107   :  { %v2218_v41 = vrot.slane %v2210_v9, %v3371_v27  ;;  %v1035_v37 = vrot.slane %v3610_v35, %v3362_v22  ;;  %v1039_v42 = vrot.slane %v3610_v35, %v3365_v23  ;;  %v2423_v54 = vcombine.low %v1011_v13, %v1015_v28 }
 0x108   :  { %2928 = vperm.xlu0 %3195, %v2373_v29   ;;  %v2424_v43 = vcombine.low %v1019_v32, %v1023_v33  ;;  %v915_v44 = vrot.slane %v3587_v57, %v3343_v15  ;;  %v2225_v46 = vrot.slane %v2211_v34, %v3371_v27  ;;  %v2425_v47 = vcombine.low %v1027_v12, %v1031_v2 }
 0x109   :  { %v919_v48 = vrot.slane %v3587_v57, %v3346_v16  ;;  %v923_v49 = vrot.slane %v3587_v57, %v3349_v17  ;;  %v2426_v50 = vcombine.low %v1035_v37, %v1039_v42  ;;  %v2433_v51 = vrot.slane %v2423_v54, %v3371_v27 }
 0x10a   :  { %v2440_v53 = vrot.slane %v2424_v43, %v3371_v27  ;;  %v927_v35 = vrot.slane %v3587_v57, %v3352_v18  ;;  %v2226_v56 = vcombine.low %v2218_v41, %v2225_v46  ;;  %v2447_v58 = vrot.slane %v2425_v47, %v3371_v27 }
 0x10b   :  { %v931_v11 = vrot.slane %v3587_v57, %v3355_v19  ;;  %v935_v60 = vrot.slane %v3587_v57, %v3358_v20  ;;  %v2454_v61 = vrot.slane %v2426_v50, %v3371_v27  ;;  %v939_v0 = vrot.slane %v3587_v57, %v3362_v22 }
 0x10c   :  { %v2455_v24 = vcombine.low %v2433_v51, %v2440_v53  ;;  %v943_v1 = vrot.slane %v3587_v57, %v3365_v23  ;;  %2919 = vperm.xlu1 %3196, %v2226_v56   ;;  %v2276_v45 = vcombine.low %v915_v44, %v919_v48  ;;  %v2277_v4 = vcombine.low %v923_v49, %v927_v35 }
 0x10d   :  { %v2278_v6 = vcombine.low %v931_v11, %v935_v60  ;;  %v1075_v7 = vrot.slane %v3643_v25, %v3343_v15  ;;  %v2456_v10 = vcombine.low %v2447_v58, %v2454_v61  ;;  %v1079_v13 = vrot.slane %v3643_v25, %v3346_v16 }
 0x10e   :  { %v2463_v21 = vrot.slane %v2455_v24, %v3371_v27  ;;  %v2279_v9 = vcombine.low %v939_v0, %v943_v1  ;;  %v2286_v28 = vrot.slane %v2276_v45, %v3371_v27  ;;  %v2293_v29 = vrot.slane %v2277_v4, %v3371_v27 }
 0x10f   :  { %v2300_v57 = vrot.slane %v2278_v6, %v3371_v27  ;;  %v1083_v32 = vrot.slane %v3643_v25, %v3349_v17  ;;  %v2470_v33 = vrot.slane %v2456_v10, %v3371_v27  ;;  %v1087_v34 = vrot.slane %v3643_v25, %v3352_v18 }
 0x110   :  { %v2307_v12 = vrot.slane %v2279_v9, %v3371_v27  ;;  %v1091_v41 = vrot.slane %v3643_v25, %v3355_v19  ;;  %v2308_v2 = vcombine.low %v2286_v28, %v2293_v29  ;;  %v1095_v37 = vrot.slane %v3643_v25, %v3358_v20 }
 0x111   :  { %v1099_v42 = vrot.slane %v3643_v25, %v3362_v22  ;;  %v1103_v54 = vrot.slane %v3643_v25, %v3365_v23  ;;  %v2471_v43 = vcombine.low %v2463_v21, %v2470_v33  ;;  %v2521_v46 = vcombine.low %v1075_v7, %v1079_v13 }
 0x112   :  { %v2309_v44 = vcombine.low %v2300_v57, %v2307_v12  ;;  %v2522_v47 = vcombine.low %v1083_v32, %v1087_v34  ;;  %v2316_v48 = vrot.slane %v2308_v2, %v3371_v27  ;;  %v2523_v49 = vcombine.low %v1091_v41, %v1095_v37 }
 0x113   :  { %v2524_v50 = vcombine.low %v1099_v42, %v1103_v54  ;;  %v979_v51 = vrot.slane %v3617_v40, %v3343_v15  ;;  %2934 = vperm.xlu0 %3195, %v2471_v43   ;;  %v2531_v35 = vrot.slane %v2521_v46, %v3371_v27  ;;  %v983_v25 = vrot.slane %v3617_v40, %v3346_v16 }
 0x114   :  { %v2323_v53 = vrot.slane %v2309_v44, %v3371_v27  ;;  %v2538_v56 = vrot.slane %v2522_v47, %v3371_v27  ;;  %v2545_v58 = vrot.slane %v2523_v49, %v3371_v27  ;;  %v987_v60 = vrot.slane %v3617_v40, %v3349_v17 }
 0x115   :  { %v2552_v11 = vrot.slane %v2524_v50, %v3371_v27  ;;  %v991_v61 = vrot.slane %v3617_v40, %v3352_v18  ;;  %v995_v1 = vrot.slane %v3617_v40, %v3355_v19  ;;  %v999_v45 = vrot.slane %v3617_v40, %v3358_v20 }
 0x116   :  { %v2324_v24 = vcombine.low %v2316_v48, %v2323_v53  ;;  %v2553_v0 = vcombine.low %v2531_v35, %v2538_v56  ;;  %v1003_v6 = vrot.slane %v3617_v40, %v3362_v22  ;;  %v1007_v7 = vrot.slane %v3617_v40, %v3365_v23 }
 0x117   :  { %v2554_v4 = vcombine.low %v2545_v58, %v2552_v11  ;;  %v2374_v10 = vcombine.low %v979_v51, %v983_v25  ;;  %v2375_v9 = vcombine.low %v987_v60, %v991_v61  ;;  %v2376_v13 = vcombine.low %v995_v1, %v999_v45 }
 0x118   :  { %2925 = vperm.xlu1 %3196, %v2324_v24   ;;  %v2561_v21 = vrot.slane %v2553_v0, %v3371_v27  ;;  %v1043_v28 = vrot.slane %v3646_v26, %v3343_v15  ;;  %v2377_v57 = vcombine.low %v1003_v6, %v1007_v7  ;;  %v1047_v33 = vrot.slane %v3646_v26, %v3346_v16 }
 0x119   :  { %v2568_v29 = vrot.slane %v2554_v4, %v3371_v27  ;;  %v2384_v32 = vrot.slane %v2374_v10, %v3371_v27  ;;  %v2391_v12 = vrot.slane %v2375_v9, %v3371_v27  ;;  %v2398_v40 = vrot.slane %v2376_v13, %v3371_v27 }
 0x11a   :  { %v1051_v34 = vrot.slane %v3646_v26, %v3349_v17  ;;  %v1055_v41 = vrot.slane %v3646_v26, %v3352_v18  ;;  %v2405_v37 = vrot.slane %v2377_v57, %v3371_v27  ;;  %v1059_v42 = vrot.slane %v3646_v26, %v3355_v19 }
 0x11b   :  { %v2569_v2 = vcombine.low %v2561_v21, %v2568_v29  ;;  %v1063_v54 = vrot.slane %v3646_v26, %v3358_v20  ;;  %v2406_v43 = vcombine.low %v2384_v32, %v2391_v12  ;;  %v1067_v44 = vrot.slane %v3646_v26, %v3362_v22 }
 0x11c   :  { %v1071_v46 = vrot.slane %v3646_v26, %v3365_v23  ;;  %v2472_v47 = vcombine.low %v1043_v28, %v1047_v33  ;;  %v2407_v48 = vcombine.low %v2398_v40, %v2405_v37  ;;  %v2473_v49 = vcombine.low %v1051_v34, %v1055_v41 }
 0x11d   :  { %2940 = vperm.xlu0 %3195, %v2569_v2   ;;  %v2474_v50 = vcombine.low %v1059_v42, %v1063_v54  ;;  %v1107_v51 = vrot.slane %v3696_v39, %v3343_v15  ;;  %v2414_v53 = vrot.slane %v2406_v43, %v3371_v27  ;;  %v1111_v25 = vrot.slane %v3696_v39, %v3346_v16 }
 0x11e   :  { %v2475_v35 = vcombine.low %v1067_v44, %v1071_v46  ;;  %v2482_v56 = vrot.slane %v2472_v47, %v3371_v27  ;;  %v2421_v58 = vrot.slane %v2407_v48, %v3371_v27  ;;  %v2489_v26 = vrot.slane %v2473_v49, %v3371_v27 }
 0x11f   :  { %v2496_v11 = vrot.slane %v2474_v50, %v3371_v27  ;;  %v1115_v60 = vrot.slane %v3696_v39, %v3349_v17  ;;  %v1119_v24 = vrot.slane %v3696_v39, %v3352_v18  ;;  %v1123_v0 = vrot.slane %v3696_v39, %v3355_v19 }
 0x120   :  { %v2503_v61 = vrot.slane %v2475_v35, %v3371_v27  ;;  %v1127_v1 = vrot.slane %v3696_v39, %v3358_v20  ;;  %v2422_v45 = vcombine.low %v2414_v53, %v2421_v58  ;;  %v2504_v4 = vcombine.low %v2482_v56, %v2489_v26 }
 0x121   :  { %v1131_v6 = vrot.slane %v3696_v39, %v3362_v22  ;;  %v1135_v7 = vrot.slane %v3696_v39, %v3365_v23  ;;  %v2570_v21 = vcombine.low %v1107_v51, %v1111_v25  ;;  %v2571_v9 = vcombine.low %v1115_v60, %v1119_v24 }
 0x122   :  { %v2505_v10 = vcombine.low %v2496_v11, %v2503_v61  ;;  %v2572_v13 = vcombine.low %v1123_v0, %v1127_v1  ;;  %2931 = vperm.xlu1 %3196, %v2422_v45   ;;  %v2512_v28 = vrot.slane %v2504_v4, %v3371_v27  ;;  %v595_v57 = vrot.slane %v3455_v63, %v3343_v15 }
 0x123   :  { %v2573_v29 = vcombine.low %v1131_v6, %v1135_v7  ;;  %v599_v32 = vrot.slane %v3455_v63, %v3346_v16  ;;  %v2580_v12 = vrot.slane %v2570_v21, %v3371_v27  ;;  %v2587_v39 = vrot.slane %v2571_v9, %v3371_v27 }
 0x124   :  { %v2519_v33 = vrot.slane %v2505_v10, %v3371_v27  ;;  %v2594_v40 = vrot.slane %v2572_v13, %v3371_v27  ;;  %v603_v41 = vrot.slane %v3455_v63, %v3349_v17  ;;  %v607_v2 = vrot.slane %v3455_v63, %v3352_v18 }
 0x125   :  { %v2601_v34 = vrot.slane %v2573_v29, %v3371_v27  ;;  %v611_v37 = vrot.slane %v3455_v63, %v3355_v19  ;;  %v2602_v54 = vcombine.low %v2580_v12, %v2587_v39  ;;  %v615_v43 = vrot.slane %v3455_v63, %v3358_v20 }
 0x126   :  { %v2520_v42 = vcombine.low %v2512_v28, %v2519_v33  ;;  %v619_v44 = vrot.slane %v3455_v63, %v3362_v22  ;;  %v623_v47 = vrot.slane %v3455_v63, %v3365_v23  ;;  %v1786_v48 = vcombine.low %v595_v57, %v599_v32 }
 0x127   :  { %v2603_v46 = vcombine.low %v2594_v40, %v2601_v34  ;;  %v1787_v49 = vcombine.low %v603_v41, %v607_v2  ;;  %v2610_v50 = vrot.slane %v2602_v54, %v3371_v27  ;;  %v1788_v51 = vcombine.low %v611_v37, %v615_v43 }
 0x128   :  { %2937 = vperm.xlu1 %3196, %v2520_v42   ;;  %v1139_v53 = vrot.slane %v3693_v38, %v3343_v15  ;;  %v1143_v35 = vrot.slane %v3693_v38, %v3346_v16  ;;  %v1789_v25 = vcombine.low %v619_v44, %v623_v47  ;;  %v1796_v58 = vrot.slane %v1786_v48, %v3371_v27 }
 0x129   :  { %v2617_v56 = vrot.slane %v2603_v46, %v3371_v27  ;;  %v1803_v26 = vrot.slane %v1787_v49, %v3371_v27  ;;  %v1810_v63 = vrot.slane %v1788_v51, %v3371_v27  ;;  %v1147_v11 = vrot.slane %v3693_v38, %v3349_v17 }
 0x12a   :  { %v1151_v60 = vrot.slane %v3693_v38, %v3352_v18  ;;  %v1155_v61 = vrot.slane %v3693_v38, %v3355_v19  ;;  %v1817_v0 = vrot.slane %v1789_v25, %v3371_v27  ;;  %v1159_v45 = vrot.slane %v3693_v38, %v3358_v20 }
 0x12b   :  { %v2618_v24 = vcombine.low %v2610_v50, %v2617_v56  ;;  %v1818_v1 = vcombine.low %v1796_v58, %v1803_v26  ;;  %v1163_v4 = vrot.slane %v3693_v38, %v3362_v22  ;;  %v1167_v6 = vrot.slane %v3693_v38, %v3365_v23 }
 0x12c   :  { %v2619_v7 = vcombine.low %v1139_v53, %v1143_v35  ;;  %v2620_v10 = vcombine.low %v1147_v11, %v1151_v60  ;;  %v1819_v21 = vcombine.low %v1810_v63, %v1817_v0  ;;  %v2621_v13 = vcombine.low %v1155_v61, %v1159_v45 }
 0x12d   :  { %2943 = vperm.xlu0 %3195, %v2618_v24   ;;  %v1826_v9 = vrot.slane %v1818_v1, %v3371_v27  ;;  %v627_v28 = vrot.slane %v3452_v62, %v3343_v15  ;;  %v2622_v29 = vcombine.low %v1163_v4, %v1167_v6  ;;  %v631_v33 = vrot.slane %v3452_v62, %v3346_v16 }
 0x12e   :  { %v2629_v57 = vrot.slane %v2619_v7, %v3371_v27  ;;  %v2636_v32 = vrot.slane %v2620_v10, %v3371_v27  ;;  %v1833_v38 = vrot.slane %v1819_v21, %v3371_v27  ;;  %v2643_v12 = vrot.slane %v2621_v13, %v3371_v27 }
 0x12f   :  { %v635_v39 = vrot.slane %v3452_v62, %v3349_v17  ;;  %v639_v40 = vrot.slane %v3452_v62, %v3352_v18  ;;  %v2650_v34 = vrot.slane %v2622_v29, %v3371_v27  ;;  %v643_v2 = vrot.slane %v3452_v62, %v3355_v19 }
 0x130   :  { %v2651_v41 = vcombine.low %v2629_v57, %v2636_v32  ;;  %v647_v37 = vrot.slane %v3452_v62, %v3358_v20  ;;  %v1834_v42 = vcombine.low %v1826_v9, %v1833_v38  ;;  %v651_v54 = vrot.slane %v3452_v62, %v3362_v22 }
 0x131   :  { %v655_v43 = vrot.slane %v3452_v62, %v3365_v23  ;;  %v1835_v44 = vcombine.low %v627_v28, %v631_v33  ;;  %v2652_v46 = vcombine.low %v2643_v12, %v2650_v34  ;;  %v1836_v48 = vcombine.low %v635_v39, %v639_v40 }
 0x132   :  { %v2659_v47 = vrot.slane %v2651_v41, %v3371_v27  ;;  %v1837_v49 = vcombine.low %v643_v2, %v647_v37  ;;  %2895 = vperm.xlu1 %3196, %v1834_v42   ;;  %v1171_v53 = vrot.slane %v3749_v59, %v3343_v15  ;;  %v1175_v35 = vrot.slane %v3749_v59, %v3346_v16 }
 0x133   :  { %v1838_v50 = vcombine.low %v651_v54, %v655_v43  ;;  %v1845_v51 = vrot.slane %v1835_v44, %v3371_v27  ;;  %v2666_v56 = vrot.slane %v2652_v46, %v3371_v27  ;;  %v1852_v62 = vrot.slane %v1836_v48, %v3371_v27 }
 0x134   :  { %v1859_v25 = vrot.slane %v1837_v49, %v3371_v27  ;;  %v1179_v58 = vrot.slane %v3749_v59, %v3349_v17  ;;  %v1183_v63 = vrot.slane %v3749_v59, %v3352_v18  ;;  %v1187_v11 = vrot.slane %v3749_v59, %v3355_v19 }
 0x135   :  { %v1866_v26 = vrot.slane %v1838_v50, %v3371_v27  ;;  %v1191_v60 = vrot.slane %v3749_v59, %v3358_v20  ;;  %v2667_v61 = vcombine.low %v2659_v47, %v2666_v56  ;;  %v1867_v24 = vcombine.low %v1845_v51, %v1852_v62 }
 0x136   :  { %v1195_v0 = vrot.slane %v3749_v59, %v3362_v22  ;;  %v1199_v1 = vrot.slane %v3749_v59, %v3365_v23  ;;  %v2668_v4 = vcombine.low %v1171_v53, %v1175_v35  ;;  %v2669_v6 = vcombine.low %v1179_v58, %v1183_v63 }
 0x137   :  { %v1868_v45 = vcombine.low %v1859_v25, %v1866_v26  ;;  %v2670_v7 = vcombine.low %v1187_v11, %v1191_v60  ;;  %2946 = vperm.xlu0 %3195, %v2667_v61   ;;  %v1875_v10 = vrot.slane %v1867_v24, %v3371_v27  ;;  %v659_v9 = vrot.slane %v3477_v31, %v3343_v15 }
 0x138   :  { %v2671_v21 = vcombine.low %v1195_v0, %v1199_v1  ;;  %v663_v13 = vrot.slane %v3477_v31, %v3346_v16  ;;  %v2678_v29 = vrot.slane %v2668_v4, %v3371_v27  ;;  %v2685_v59 = vrot.slane %v2669_v6, %v3371_v27 }
 0x139   :  { %v1882_v28 = vrot.slane %v1868_v45, %v3371_v27  ;;  %v2692_v57 = vrot.slane %v2670_v7, %v3371_v27  ;;  %v667_v33 = vrot.slane %v3477_v31, %v3349_v17  ;;  %v671_v38 = vrot.slane %v3477_v31, %v3352_v18 }
 0x13a   :  { %v2699_v32 = vrot.slane %v2671_v21, %v3371_v27  ;;  %v675_v12 = vrot.slane %v3477_v31, %v3355_v19  ;;  %v2700_v40 = vcombine.low %v2678_v29, %v2685_v59  ;;  %v679_v34 = vrot.slane %v3477_v31, %v3358_v20 }
 0x13b   :  { %v1883_v39 = vcombine.low %v1875_v10, %v1882_v28  ;;  %v683_v41 = vrot.slane %v3477_v31, %v3362_v22  ;;  %v687_v37 = vrot.slane %v3477_v31, %v3365_v23  ;;  %v1884_v42 = vcombine.low %v659_v9, %v663_v13 }
 0x13c   :  { %v2701_v2 = vcombine.low %v2692_v57, %v2699_v32  ;;  %v1885_v54 = vcombine.low %v667_v33, %v671_v38  ;;  %v2708_v43 = vrot.slane %v2700_v40, %v3371_v27  ;;  %v1886_v44 = vcombine.low %v675_v12, %v679_v34 }
 0x13d   :  { %2898 = vperm.xlu1 %3196, %v1883_v39   ;;  %v1203_v46 = vrot.slane %v3744_v14, %v3343_v15  ;;  %v1207_v47 = vrot.slane %v3744_v14, %v3346_v16  ;;  %v1887_v49 = vcombine.low %v683_v41, %v687_v37  ;;  %v1894_v50 = vrot.slane %v1884_v42, %v3371_v27 }
 0x13e   :  { %v2715_v48 = vrot.slane %v2701_v2, %v3371_v27  ;;  %v1901_v51 = vrot.slane %v1885_v54, %v3371_v27  ;;  %v1908_v31 = vrot.slane %v1886_v44, %v3371_v27  ;;  %v1211_v53 = vrot.slane %v3744_v14, %v3349_v17 }
 0x13f   :  { %v1215_v35 = vrot.slane %v3744_v14, %v3352_v18  ;;  %v1219_v56 = vrot.slane %v3744_v14, %v3355_v19  ;;  %v1915_v25 = vrot.slane %v1887_v49, %v3371_v27  ;;  %v1223_v26 = vrot.slane %v3744_v14, %v3358_v20 }
 0x140   :  { %v2716_v62 = vcombine.low %v2708_v43, %v2715_v48  ;;  %v1916_v58 = vcombine.low %v1894_v50, %v1901_v51  ;;  %v1227_v63 = vrot.slane %v3744_v14, %v3362_v22  ;;  %v1231_v11 = vrot.slane %v3744_v14, %v3365_v23 }
 0x141   :  { %v2717_v60 = vcombine.low %v1203_v46, %v1207_v47  ;;  %v2718_v61 = vcombine.low %v1211_v53, %v1215_v35  ;;  %v1917_v24 = vcombine.low %v1908_v31, %v1915_v25  ;;  %v2719_v1 = vcombine.low %v1219_v56, %v1223_v26 }
 0x142   :  { %2949 = vperm.xlu0 %3195, %v2716_v62   ;;  %v1924_v0 = vrot.slane %v1916_v58, %v3371_v27  ;;  %v691_v45 = vrot.slane %v3474_v30, %v3343_v15  ;;  %v2720_v4 = vcombine.low %v1227_v63, %v1231_v11  ;;  %v695_v10 = vrot.slane %v3474_v30, %v3346_v16 }
 0x143   :  { %v2727_v6 = vrot.slane %v2717_v60, %v3371_v27  ;;  %v2734_v7 = vrot.slane %v2718_v61, %v3371_v27  ;;  %v1931_v14 = vrot.slane %v1917_v24, %v3371_v27  ;;  %v2741_v21 = vrot.slane %v2719_v1, %v3371_v27 }
 0x144   :  { %v699_v9 = vrot.slane %v3474_v30, %v3349_v17  ;;  %v703_v13 = vrot.slane %v3474_v30, %v3352_v18  ;;  %v2748_v28 = vrot.slane %v2720_v4, %v3371_v27  ;;  %v707_v59 = vrot.slane %v3474_v30, %v3355_v19 }
 0x145   :  { %v2749_v29 = vcombine.low %v2727_v6, %v2734_v7  ;;  %v711_v57 = vrot.slane %v3474_v30, %v3358_v20  ;;  %v1932_v32 = vcombine.low %v1924_v0, %v1931_v14  ;;  %v715_v33 = vrot.slane %v3474_v30, %v3362_v22 }
 0x146   :  { %v719_v38 = vrot.slane %v3474_v30, %v3365_v23  ;;  %v1933_v12 = vcombine.low %v691_v45, %v695_v10  ;;  %v2750_v39 = vcombine.low %v2741_v21, %v2748_v28  ;;  %v1934_v34 = vcombine.low %v699_v9, %v703_v13 }
 0x147   :  { %v2757_v40 = vrot.slane %v2749_v29, %v3371_v27  ;;  %v1935_v41 = vcombine.low %v707_v59, %v711_v57  ;;  %2901 = vperm.xlu1 %3196, %v1932_v32   ;;  %v1235_v42 = vrot.slane %v3800_v55, %v3343_v15  ;;  %v1239_v54 = vrot.slane %v3800_v55, %v3346_v16 }
 0x148   :  { %v1936_v2 = vcombine.low %v715_v33, %v719_v38  ;;  %v1943_v37 = vrot.slane %v1933_v12, %v3371_v27  ;;  %v2764_v43 = vrot.slane %v2750_v39, %v3371_v27  ;;  %v1950_v30 = vrot.slane %v1934_v34, %v3371_v27 }
 0x149   :  { %v1957_v44 = vrot.slane %v1935_v41, %v3371_v27  ;;  %v1243_v46 = vrot.slane %v3800_v55, %v3349_v17  ;;  %v1247_v48 = vrot.slane %v3800_v55, %v3352_v18  ;;  %v1251_v49 = vrot.slane %v3800_v55, %v3355_v19 }
 0x14a   :  { %v1964_v47 = vrot.slane %v1936_v2, %v3371_v27  ;;  %v1255_v50 = vrot.slane %v3800_v55, %v3358_v20  ;;  %v2765_v51 = vcombine.low %v2757_v40, %v2764_v43  ;;  %v1965_v31 = vcombine.low %v1943_v37, %v1950_v30 }
 0x14b   :  { %v1259_v53 = vrot.slane %v3800_v55, %v3362_v22  ;;  %v1263_v35 = vrot.slane %v3800_v55, %v3365_v23  ;;  %v2766_v62 = vcombine.low %v1235_v42, %v1239_v54  ;;  %v2767_v25 = vcombine.low %v1243_v46, %v1247_v48 }
 0x14c   :  { %v1966_v56 = vcombine.low %v1957_v44, %v1964_v47  ;;  %v2768_v58 = vcombine.low %v1251_v49, %v1255_v50  ;;  %2952 = vperm.xlu0 %3195, %v2765_v51   ;;  %v1973_v26 = vrot.slane %v1965_v31, %v3371_v27  ;;  %v723_v11 = vrot.slane %v3495_v36, %v3343_v15 }
 0x14d   :  { %v2769_v63 = vcombine.low %v1259_v53, %v1263_v35  ;;  %v727_v60 = vrot.slane %v3495_v36, %v3346_v16  ;;  %v2776_v24 = vrot.slane %v2766_v62, %v3371_v27  ;;  %v2783_v55 = vrot.slane %v2767_v25, %v3371_v27 }
 0x14e   :  { %v1980_v61 = vrot.slane %v1966_v56, %v3371_v27  ;;  %v2790_v0 = vrot.slane %v2768_v58, %v3371_v27  ;;  %v731_v45 = vrot.slane %v3495_v36, %v3349_v17  ;;  %v735_v4 = vrot.slane %v3495_v36, %v3352_v18 }
 0x14f   :  { %v2797_v1 = vrot.slane %v2769_v63, %v3371_v27  ;;  %v739_v6 = vrot.slane %v3495_v36, %v3355_v19  ;;  %v2798_v10 = vcombine.low %v2776_v24, %v2783_v55  ;;  %v743_v14 = vrot.slane %v3495_v36, %v3358_v20 }
 0x150   :  { %v1981_v7 = vcombine.low %v1973_v26, %v1980_v61  ;;  %v747_v21 = vrot.slane %v3495_v36, %v3362_v22  ;;  %v751_v13 = vrot.slane %v3495_v36, %v3365_v23  ;;  %v1982_v28 = vcombine.low %v723_v11, %v727_v60 }
 0x151   :  { %v2799_v9 = vcombine.low %v2790_v0, %v2797_v1  ;;  %v1983_v29 = vcombine.low %v731_v45, %v735_v4  ;;  %v2806_v59 = vrot.slane %v2798_v10, %v3371_v27  ;;  %v1984_v57 = vcombine.low %v739_v6, %v743_v14 }
 0x152   :  { %2904 = vperm.xlu1 %3196, %v1981_v7   ;;  %v1267_v32 = vrot.slane %v3797_v3, %v3343_v15  ;;  %v1271_v33 = vrot.slane %v3797_v3, %v3346_v16  ;;  %v1985_v12 = vcombine.low %v747_v21, %v751_v13  ;;  %v1992_v39 = vrot.slane %v1982_v28, %v3371_v27  ;;  %v4179_v21 = vpop.permute.xlu1 %2868 }
 0x153   :  { %v2813_v38 = vrot.slane %v2799_v9, %v3371_v27  ;;  %v1999_v40 = vrot.slane %v1983_v29, %v3371_v27  ;;  %v2006_v36 = vrot.slane %v1984_v57, %v3371_v27  ;;  %v1275_v34 = vrot.slane %v3797_v3, %v3349_v17  ;;  %v2866_v57 = vpop.permute.xlu0 %2865 }
 0x154   :  { %v1279_v41 = vrot.slane %v3797_v3, %v3352_v18  ;;  %v1283_v2 = vrot.slane %v3797_v3, %v3355_v19  ;;  %v2013_v42 = vrot.slane %v1985_v12, %v3371_v27  ;;  %v1287_v43 = vrot.slane %v3797_v3, %v3358_v20 }
 0x155   :  { %v2814_v37 = vcombine.low %v2806_v59, %v2813_v38  ;;  %v2014_v54 = vcombine.low %v1992_v39, %v1999_v40  ;;  %v1291_v30 = vrot.slane %v3797_v3, %v3362_v22  ;;  %v1295_v44 = vrot.slane %v3797_v3, %v3365_v23 }
 0x156   :  { %v2815_v46 = vcombine.low %v1267_v32, %v1271_v33  ;;  %v2816_v47 = vcombine.low %v1275_v34, %v1279_v41  ;;  %v2015_v48 = vcombine.low %v2006_v36, %v2013_v42  ;;  %v2817_v50 = vcombine.low %v1283_v2, %v1287_v43  ;;  %v4181_v9 = vpop.permute.xlu1 %2871 }
 0x157   :  { %2955 = vperm.xlu0 %3195, %v2814_v37   ;;  %v2022_v49 = vrot.slane %v2014_v54, %v3371_v27  ;;  %v755_v51 = vrot.slane %v3492_v52, %v3343_v15  ;;  %v2818_v31 = vcombine.low %v1291_v30, %v1295_v44  ;;  %v759_v56 = vrot.slane %v3492_v52, %v3346_v16  ;;  %v4193_v33 = vpop.permute.xlu0 %2892 }
 0x158   :  { %v2825_v53 = vrot.slane %v2815_v46, %v3371_v27  ;;  %v2832_v35 = vrot.slane %v2816_v47, %v3371_v27  ;;  %v2029_v3 = vrot.slane %v2015_v48, %v3371_v27  ;;  %v2839_v62 = vrot.slane %v2817_v50, %v3371_v27 }
 0x159   :  { %v763_v25 = vrot.slane %v3492_v52, %v3349_v17  ;;  %v767_v58 = vrot.slane %v3492_v52, %v3352_v18  ;;  %v2846_v15 = vrot.slane %v2818_v31, %v3371_v27  ;;  %v771_v63 = vrot.slane %v3492_v52, %v3355_v19 }
 0x15a   :  { %v2847_v26 = vcombine.low %v2825_v53, %v2832_v35  ;;  %v775_v11 = vrot.slane %v3492_v52, %v3358_v20  ;;  %v2030_v16 = vcombine.low %v2022_v49, %v2029_v3  ;;  %v779_v60 = vrot.slane %v3492_v52, %v3362_v22  ;;  %v4183_v13 = vpop.permute.xlu1 %2874 }
 0x15b   :  { %v783_v61 = vrot.slane %v3492_v52, %v3365_v23  ;;  %v2031_v17 = vcombine.low %v755_v51, %v759_v56  ;;  %v2848_v24 = vcombine.low %v2839_v62, %v2846_v15  ;;  %v2032_v55 = vcombine.low %v763_v25, %v767_v58 }
 0x15c   :  { %v2855_v18 = vrot.slane %v2847_v26, %v3371_v27  ;;  %v2033_v0 = vcombine.low %v771_v63, %v775_v11  ;;  %2907 = vperm.xlu1 %3196, %v2030_v16   ;;  %v4204_v43 = vand.u32 127, %v272_v5 }
 0x15d   :  { %v2034_v1 = vcombine.low %v779_v60, %v783_v61  ;;  %v2041_v19 = vrot.slane %v2031_v17, %v3371_v27  ;;  %v2862_v45 = vrot.slane %v2848_v24, %v3371_v27  ;;  %v2048_v20 = vrot.slane %v2032_v55, %v3371_v27 }
 0x15e   :  { %v2055_v4 = vrot.slane %v2033_v0, %v3371_v27  ;;  %v4185_v28 = vpop.permute.xlu1 %2877  ;;  %v2973_v44 = vadd.s32 4294967280, %v4204_v43  ;;  %v2966_v46 = vadd.s32 4294967288, %v4204_v43  ;;  %v2964_v48 = vsub.s32 %v4204_v43, %v3331_v8 }
 0x15f   :  { %v2062_v22 = vrot.slane %v2034_v1, %v3371_v27  ;;  %v2863_v6 = vcombine.low %v2855_v18, %v2862_v45  ;;  %v2063_v23 = vcombine.low %v2041_v19, %v2048_v20  ;;  %v2987_v50 = vadd.s32 4294967264, %v4204_v43 }
 0x160   :  { %v2976_v49 = vsub.s32 %v2973_v44, %v3331_v8  ;;  %v2969_v31 = vsub.s32 %v2966_v46, %v3331_v8  ;;  %v2980_v53 = vadd.s32 4294967272, %v4204_v43  ;;  %v3001_v25 = vadd.s32 4294967248, %v4204_v43 }
 0x161   :  { %v2064_v52 = vcombine.low %v2055_v4, %v2062_v22  ;;  %2958 = vperm.xlu0 %3195, %v2863_v6   ;;  %v2071_v7 = vrot.slane %v2063_v23, %v3371_v27  ;;  %v2990_v62 = vsub.s32 %v2987_v50, %v3331_v8  ;;  %v2994_v26 = vadd.s32 4294967256, %v4204_v43 }
 0x162   :  { %v4187_v29 = vpop.permute.xlu1 %2880  ;;  %v2983_v15 = vsub.s32 %v2980_v53, %v3331_v8  ;;  %v2970_v17 = vrot.slane %v4179_v21, %v2969_v31  ;;  %v3004_v24 = vsub.s32 %v3001_v25, %v3331_v8  ;;  %v3015_v18 = vadd.s32 4294967232, %v4204_v43 }
 0x163   :  { %v2078_v10 = vrot.slane %v2064_v52, %v3371_v27  ;;  %v3022_v55 = vadd.s32 4294967224, %v4204_v43  ;;  %v2997_v0 = vsub.s32 %v2994_v26, %v3331_v8  ;;  %v3008_v1 = vadd.s32 4294967240, %v4204_v43 }
 0x164   :  { %v2965_v45 = vrot.slane %v2866_v57, %v2964_v48  ;;  %v2977_v20 = vrot.slane %v4181_v9, %v2976_v49  ;;  %v2984_v23 = vrot.slane %v4183_v13, %v2983_v15 }
 0x165   :  { %v2079_v14 = vcombine.low %v2071_v7, %v2078_v10  ;;  %v2991_v10 = vrot.slane %v4185_v28, %v2990_v62  ;;  %v3025_v57 = vsub.s32 %v3022_v55, %v3331_v8  ;;  %v3011_v9 = vsub.s32 %v3008_v1, %v3331_v8 }
 0x166   :  { %v4189_v59 = vpop.permute.xlu1 %2883  ;;  %v2972_v7 = vsel %vm2971_vm0, %v2970_v17, %v2965_v45  ;;  %v3029_v28 = vadd.s32 4294967216, %v4204_v43 }
 0x167   :  { %2910 = vperm.xlu1 %3196, %v2079_v14   ;;  %v3018_v14 = vsub.s32 %v3015_v18, %v3331_v8  ;;  %v3005_v46 = vrot.slane %v4189_v59, %v3004_v24  ;;  %v3026_v17 = vrot.slane %v4193_v33, %v3025_v57 }
 0x168   :  { %v3032_v53 = vsub.s32 %v3029_v28, %v3331_v8 }
 0x16a   :  { %v4191_v32 = vpop.permute.xlu1 %2886 }
 0x16f   :  { %v2917_v12 = vpop.permute.xlu0 %2916 }
 0x170   :  { %v3078_v3 = vrot.slane %v2917_v12, %v2969_v31  ;;  %v3050_v31 = vadd.s32 4294967192, %v4204_v43 }
 0x174   :  { %v4195_v38 = vpop.permute.xlu1 %2889 }
 0x17b   :  { %v2923_v40 = vpop.permute.xlu0 %2922 }
 0x17c   :  { %v3088_v61 = vrot.slane %v2923_v40, %v2983_v15 }
 0x180   :  { %v2914_v39 = vpop.permute.xlu1 %2913 }
 0x181   :  { %v3074_v35 = vrot.slane %v2914_v39, %v2964_v48  ;;  %v2979_v39 = vsel %vm2978_vm1, %v2977_v20, %v2972_v7  ;;  %v3043_v48 = vadd.s32 4294967200, %v4204_v43 }
 0x183   :  { %v3079_v63 = vsel %vm2971_vm0, %v3078_v3, %v3074_v35  ;;  %v3057_v35 = vadd.s32 4294967184, %v4204_v43 }
 0x187   :  { %v2929_v34 = vpop.permute.xlu0 %2928 }
 0x188   :  { %v3098_v52 = vrot.slane %v2929_v34, %v2997_v0  ;;  %v2998_v34 = vrot.slane %v4187_v29, %v2997_v0  ;;  %v3019_v29 = vrot.slane %v4195_v38, %v3018_v14  ;;  %v3046_v38 = vsub.s32 %v3043_v48, %v3331_v8 }
 0x18b   :  { %v2920_v36 = vpop.permute.xlu1 %2919 }
 0x18c   :  { %v3083_v56 = vrot.slane %v2920_v36, %v2976_v49  ;;  %v2986_v36 = vsel %vm2985_vm2, %v2984_v23, %v2979_v39 }
 0x18d   :  { %v2993_v44 = vsel %vm2992_vm3, %v2991_v10, %v2986_v36 }
 0x18e   :  { %v3084_v11 = vsel %vm2978_vm1, %v3083_v56, %v3079_v63  ;;  %v3000_v56 = vsel %vm2999_vm4, %v2998_v34, %v2993_v44  ;;  %v3053_v63 = vsub.s32 %v3050_v31, %v3331_v8 }
 0x18f   :  { %v3089_v19 = vsel %vm2985_vm2, %v3088_v61, %v3084_v11  ;;  %v3007_v25 = vsel %vm3006_vm5, %v3005_v46, %v3000_v56 }
 0x192   :  { %v4197_v2 = vpop.permute.xlu0 %2934 }
 0x197   :  { %v2926_v41 = vpop.permute.xlu1 %2925 }
 0x198   :  { %v3093_v16 = vrot.slane %v2926_v41, %v2990_v62  ;;  %v3108_v41 = vrot.slane %v4197_v2, %v3011_v9  ;;  %v3064_v62 = vadd.s32 4294967176, %v4204_v43 }
 0x19a   :  { %v3094_v4 = vsel %vm2992_vm3, %v3093_v16, %v3089_v19  ;;  %v3067_v55 = vsub.s32 %v3064_v62, %v3331_v8 }
 0x19b   :  { %v3099_v12 = vsel %vm2999_vm4, %v3098_v52, %v3094_v4 }
 0x19c   :  { %v4199_v42 = vpop.permute.xlu0 %2940 }
 0x19d   :  { %v3118_v3 = vrot.slane %v4199_v42, %v3025_v57 }
 0x1a1   :  { %v2932_v37 = vpop.permute.xlu1 %2931 }
 0x1a2   :  { %v3103_v22 = vrot.slane %v2932_v37, %v3004_v24  ;;  %v3036_v37 = vadd.s32 4294967208, %v4204_v43  ;;  %v3060_v43 = vsub.s32 %v3057_v35, %v3331_v8 }
 0x1a4   :  { %v3104_v13 = vsel %vm3006_vm5, %v3103_v22, %v3099_v12 }
 0x1a5   :  { %v3109_v50 = vsel %vm3013_vm6, %v3108_v41, %v3104_v13 }
 0x1a7   :  { %v4201_v54 = vpop.permute.xlu1 %2937 }
 0x1a8   :  { %v3113_v40 = vrot.slane %v4201_v54, %v3018_v14  ;;  %v3012_v54 = vrot.slane %v4191_v32, %v3011_v9  ;;  %v3039_v32 = vsub.s32 %v3036_v37, %v3331_v8 }
 0x1aa   :  { %v3114_v2 = vsel %vm3020_vm7, %v3113_v40, %v3109_v50  ;;  %v3014_v15 = vsel %vm3013_vm6, %v3012_v54, %v3007_v25 }
 0x1ab   :  { %v3119_v26 = vsel %vm3027_vm8, %v3118_v3, %v3114_v2  ;;  %v3021_v11 = vsel %vm3020_vm7, %v3019_v29, %v3014_v15 }
 0x1ac   :  { %v4206_v30 = vpop.permute.xlu0 %2943 }
 0x1ad   :  { %v3123_v42 = vrot.slane %v4206_v30, %v3032_v53 }
 0x1af   :  { %v3124_v0 = vsel %vm3034_vm9, %v3123_v42, %v3119_v26 }
 0x1b1   :  { %v4210_v47 = vpop.permute.xlu1 %2895 }
 0x1b2   :  { %v3033_v16 = vrot.slane %v4210_v47, %v3032_v53  ;;  %v3028_v47 = vsel %vm3027_vm8, %v3026_v17, %v3021_v11 }
 0x1b6   :  { %v4216_v51 = vpop.permute.xlu0 %2946 }
 0x1b7   :  { %v3128_v24 = vrot.slane %v4216_v51, %v3039_v32  ;;  %v3035_v51 = vsel %vm3034_vm9, %v3033_v16, %v3028_v47 }
 0x1b9   :  { %v3129_v8 = vsel %vm3041_vm10, %v3128_v24, %v3124_v0 }
 0x1bc   :  { %v4222_v58 = vpop.permute.xlu1 %2898 }
 0x1bd   :  { %v3040_v18 = vrot.slane %v4222_v58, %v3039_v32 }
 0x1bf   :  { %v3042_v4 = vsel %vm3041_vm10, %v3040_v18, %v3035_v51 }
 0x1c1   :  { %v4228_v60 = vpop.permute.xlu0 %2949 }
 0x1c2   :  { %v3133_v1 = vrot.slane %v4228_v60, %v3046_v38 }
 0x1c4   :  { %v3134_v23 = vsel %vm3048_vm11, %v3133_v1, %v3129_v8 }
 0x1c6   :  { %v4239_v6 = vpop.permute.xlu1 %2901 }
 0x1c7   :  { %v3047_v30 = vrot.slane %v4239_v6, %v3046_v38 }
 0x1c9   :  { %v3049_v60 = vsel %vm3048_vm11, %v3047_v30, %v3042_v4 }
 0x1cb   :  { %v4245_v21 = vpop.permute.xlu0 %2952 }
 0x1cc   :  { %v3138_v45 = vrot.slane %v4245_v21, %v3053_v63 }
 0x1ce   :  { %v3139_v52 = vsel %vm3055_vm12, %v3138_v45, %v3134_v23 }
 0x1d1   :  { %v2905_v49 = vpop.permute.xlu1 %2904 }
 0x1d2   :  { %v3054_v33 = vrot.slane %v2905_v49, %v3053_v63 }
 0x1d4   :  { %v3056_v7 = vsel %vm3055_vm12, %v3054_v33, %v3049_v60 }
 0x1d6   :  { %v2956_v59 = vpop.permute.xlu0 %2955 }
 0x1d7   :  { %v3143_v58 = vrot.slane %v2956_v59, %v3060_v43 }
 0x1d9   :  { %v3144_v14 = vsel %vm3062_vm13, %v3143_v58, %v3139_v52 }
 0x1db   :  { %v2908_v61 = vpop.permute.xlu1 %2907 }
 0x1dc   :  { %v3061_v20 = vrot.slane %v2908_v61, %v3060_v43 }
 0x1de   :  { %v3063_v57 = vsel %vm3062_vm13, %v3061_v20, %v3056_v7 }
 0x1e0   :  { %v2959_v19 = vpop.permute.xlu0 %2958 }
 0x1e1   :  { %v3148_v22 = vrot.slane %v2959_v19, %v3067_v55 }
 0x1e3   :  { %v3149_v21 = vsel %vm3069_vm14, %v3148_v22, %v3144_v14 }
 0x1e6   :  { %v2911_v6 = vpop.permute.xlu1 %2910 }
 0x1e7   :  { %v3068_v10 = vrot.slane %v2911_v6, %v3067_v55 }
 0x1e9   :  { %v3070_v9 = vsel %vm3069_vm14, %v3068_v10, %v3063_v57 }
 0x1ea   :  { %v3150_v12 = vcombine.low %v3070_v9, %v3149_v21 }
 0x1ec   :  { %v3157_v39 = vrot.slane %v3150_v12, %v3371_v27 }
 0x1ee   :  { %v3164_v13 = vrot.slane %v3157_v39, %v3371_v27 }
 0x1f0   :  { %3170 = vst.msk [vmem:[#allocation7] sm:$0x3] %vm3168_vm15, %v3164_v13 }
 0x1f1   :  { %3232 = shalt.err (!%p3229_p12)
}
 0x1f2   :  { %s3233_s11 = scalar_lea.hbm %s4310_s4, 32 }
 0x1f3   :  { %p3234_p13 = scmp.ne.s32.totalorder %s4310_s4, %s3233_s11  ;;  %p3237_p0 = scmp.lt.u32.totalorder %s3233_s11, %s4310_s4 }
 0x1f5   :  { %p3239_p1 = pnand %p3237_p0, %p3234_p13 }
 0x1f7   :  { %3242 = shalt.err (!%p3239_p1)
}
 0x1f8   :  { %3180 = dma.vmem_to_hbm [thread:$0]  %s3178_s7, 32, %s4310_s4, [#allocation6]  }
 0x1f9   :  { %3245 = dma.done.wait [#allocation6], 32  }
 0x1fa   :  { %3246 = vsyncadd [#allocation6], 4294967264 }
 0x1fb   :  { %3184 = vsyncpa [#allocation5], 1 }
 0x1fc   :  { %3185 = vsyncpa [#allocation6], 1 }

</bundles_post_ra>
